<compile_context>
chip_gen: v5e
topology: v5e:2x2
jax: 0.10.0
libtpu: 0.0.40
codegen_flags: <defaults>
</compile_context>

<pallas_src>
import functools

import jax
import jax.numpy as jnp
from jax.experimental import pallas as pl
from jax.experimental.pallas import tpu as pltpu

GROUP = 16  # batch rows folded side-by-side into the lane dimension


def _round_up(x, m):
    return (x + m - 1) // m * m


# -----------------------------------------------------------------------------
# Kernel: two MXU matmuls + bias/relu.  All refs are per-grid-step tiles.
# -----------------------------------------------------------------------------
def _predictor_kernel(xg_ref, w1_ref, b1_ref, w2_ref, b2_ref, out_ref):
    # xg_ref : (TR, 3G)         grouped xyz (G batch rows per output row)
    # w1_ref : (3G, (H+6)G)     block-diag layer-1 weight (+/- identity appended)
    # b1_ref : (1, (H+6)G)
    # w2_ref : ((H+6)G, 3kG)    block-diag layer-2 weight (per-coord replicated,
    # b2_ref : (1, 3kG)          xyz pass-through rows folded in)
    # out_ref: (TR, 3kG)        lane-dense output slab (3kG multiple of 128)
    h = jnp.dot(xg_ref[...], w1_ref[...], preferred_element_type=jnp.float32)
    h = jnp.maximum(h + b1_ref[...], 0.0)
    out = jnp.dot(h, w2_ref[...], preferred_element_type=jnp.float32)
    out_ref[...] = (out + b2_ref[...]).astype(out_ref.dtype)


# -----------------------------------------------------------------------------
# One-time weight preprocessing (run OUTSIDE the jitted forward).
# -----------------------------------------------------------------------------
def prepare_params(w1, b1, w2, b2, *, group=GROUP):
    """w1:(3,H) b1:(H,) w2:(H,k) b2:(k,)  (PyTorch Linear weights, transposed).

    Returns block-diagonal grouped weights for the lane-dense kernel.
    """
    H = w1.shape[1]
    k = w2.shape[1]
    dt = w1.dtype
    eye3 = jnp.eye(3, dtype=dt)

    # relu(x) - relu(-x) == x: append +/- identity channels so the xyz
    # pass-through rides through both MXU matmuls (no VPU broadcast-madds).
    w1_ext = jnp.concatenate([w1, eye3, -eye3], axis=1)            # (3, H+6)
    b1_ext = jnp.concatenate([b1, jnp.zeros((6,), dt)])            # (H+6,)
    w2e = jnp.repeat(w2, 3, axis=1)                                # (H, 3k): col 3i+c = w2[:, i]
    t = jnp.tile(eye3, (1, k))                                     # (3, 3k): t[c, 3i+c] = 1
    w2_ext = jnp.concatenate([w2e, t, -t], axis=0)                 # (H+6, 3k)
    b2_ext = jnp.repeat(b2, 3)                                     # (3k,):  b2_ext[3i+c] = b2[i]

    # Block-diagonal expansion: G batch rows share one lane-dense output row.
    eg = jnp.eye(group, dtype=dt)
    w1_blk = (eg[:, None, :, None] * w1_ext[None, :, None, :]
              ).reshape(3 * group, (H + 6) * group)
    w2_blk = (eg[:, None, :, None] * w2_ext[None, :, None, :]
              ).reshape((H + 6) * group, 3 * k * group)
    b1_blk = jnp.tile(b1_ext, group).reshape(1, (H + 6) * group)
    b2_blk = jnp.tile(b2_ext, group).reshape(1, 3 * k * group)
    return w1_blk, b1_blk, w2_blk, b2_blk


# -----------------------------------------------------------------------------
# Jitted forward.
# -----------------------------------------------------------------------------
@functools.partial(jax.jit, static_argnames=("group", "tile_b"))
def _forward(xyz, w1_blk, b1_blk, w2_blk, b2_blk, *, group, tile_b):
    B = xyz.shape[0]
    dt = xyz.dtype
    he_g = w1_blk.shape[1]                      # (H+6) * group
    out_g = w2_blk.shape[1]                     # 3*k   * group
    k = out_g // (3 * group)

    # Batch tiling: rows per grid step (multiple of 8*group so the grouped
    # sublane dim stays a multiple of 8); keep >= 2 grid steps when there is
    # enough work so the ("parallel",) axis feeds both v7x TensorCores.
    row_q = 8 * group
    tile_b = _round_up(max(min(tile_b, _round_up(B, row_q)), row_q), row_q)
    if B > row_q:
        tile_b = min(tile_b, _round_up(-(-B // 2), row_q))
    b_pad = _round_up(B, tile_b)

    xyz_p = jnp.pad(xyz, ((0, b_pad - B), (0, 0))) if b_pad != B else xyz
    xg = xyz_p.reshape(b_pad // group, 3 * group)   # free contiguous view

    tile_r = tile_b // group                        # grouped rows per grid step
    grid = (b_pad // tile_b,)

    # Explicit scoped-VMEM budget: double-buffered I/O + resident weights +
    # the (tile_r, (H+6)G) f32 hidden temporary, plus headroom.
    lane = lambda n: _round_up(n, 128)
    est = 4 * (2 * (tile_r * lane(3 * group)
                    + tile_r * lane(out_g)
                    + _round_up(3 * group, 8) * lane(he_g)
                    + 8 * lane(he_g)
                    + he_g * lane(out_g)
                    + 8 * lane(out_g))
               + 2 * tile_r * lane(he_g))
    vmem_bytes = int(min(max(est + (8 << 20), 16 << 20), 48 << 20))

    const = lambda i: (0, 0)                        # weights stay resident
    out = pl.pallas_call(
        _predictor_kernel,
        out_shape=jax.ShapeDtypeStruct((b_pad // group, out_g), dt),
        grid=grid,
        in_specs=[
            pl.BlockSpec((tile_r, 3 * group), lambda i: (i, 0)),   # grouped xyz
            pl.BlockSpec(w1_blk.shape, const),
            pl.BlockSpec(b1_blk.shape, const),
            pl.BlockSpec(w2_blk.shape, const),
            pl.BlockSpec(b2_blk.shape, const),
        ],
        out_specs=pl.BlockSpec((tile_r, out_g), lambda i: (i, 0)),
        compiler_params=pltpu.CompilerParams(
            dimension_semantics=("parallel",),
            vmem_limit_bytes=vmem_bytes),
    )(xg, w1_blk, b1_blk, w2_blk, b2_blk)

    # (b_pad/G, G*3k) is byte-identical to (b_pad, k, 3): free reshape + slice.
    return out.reshape(b_pad, k, 3)[:B]


def spatial_pattern_predictor(xyz, prepared, *, tile_b=2048, group=GROUP):
    """xyz: (B, 3) f32; prepared = prepare_params(w1, b1, w2, b2).

    Returns (B, k, 3) with out[b, i, c] = xyz[b, c] + mlp(xyz)[b, i].
    """
    return _forward(xyz, *prepared, group=group, tile_b=tile_b)


# -----------------------------------------------------------------------------
# Deterministic init (PyTorch Linear shapes, stored transposed) + reference.
# -----------------------------------------------------------------------------
def init_params(key, hidden_dim=64, k=8):
    k1, k2, k3, k4 = jax.random.split(key, 4)
    bound1 = 1.0 / jnp.sqrt(3.0)
    bound2 = 1.0 / jnp.sqrt(float(hidden_dim))
    w1 = jax.random.uniform(k1, (3, hidden_dim), jnp.float32, -bound1, bound1)
    b1 = jax.random.uniform(k2, (hidden_dim,), jnp.float32, -bound1, bound1)
    w2 = jax.random.uniform(k3, (hidden_dim, k), jnp.float32, -bound2, bound2)
    b2 = jax.random.uniform(k4, (k,), jnp.float32, -bound2, bound2)
    return w1, b1, w2, b2


def reference_forward(xyz, w1, b1, w2, b2):
    h = jnp.maximum(jnp.dot(xyz, w1, precision="highest") + b1, 0.0)
    off = jnp.dot(h, w2, precision="highest") + b2             # (B, k)
    return xyz[:, None, :] + off[:, :, None]                   # (B, k, 3)
    # TODO(synk): offsets.detach() is an autograd-only op; values are identical.


if __name__ == "__main__":
    H, K = 64, 8
    key = jax.random.PRNGKey(0)
    k_x, k_p, k_x2 = jax.random.split(key, 3)
    w1, b1, w2, b2 = init_params(k_p, hidden_dim=H, k=K)
    prepared = prepare_params(w1, b1, w2, b2)   # one-time, outside the jit

    # Small case matching the module's intended use (B = 2).
    xyz = jax.random.normal(k_x, (2, 3), jnp.float32)
    out = jax.block_until_ready(spatial_pattern_predictor(xyz, prepared))
    ref = reference_forward(xyz, w1, b1, w2, b2)
    assert out.shape == (2, K, 3), out.shape
    assert jnp.allclose(out, ref, atol=1e-4, rtol=1e-4), "mismatch (B=2)"

    # Exercise the multi-step grid / padded tail / megacore split path.
    xyz2 = jax.random.normal(k_x2, (2052, 3), jnp.float32)
    out2 = jax.block_until_ready(
        spatial_pattern_predictor(xyz2, prepared, tile_b=512))
    ref2 = reference_forward(xyz2, w1, b1, w2, b2)
    assert out2.shape == (2052, K, 3), out2.shape
    assert jnp.allclose(out2, ref2, atol=1e-4, rtol=1e-4), "mismatch (B=2052)"

    print("KERNEL_OK")
</pallas_src>

<mosaic_0001>
module attributes {stable_mosaic.version = 11 : i64} {
  func.func @_predictor_kernel(%arg0: i32, %arg1: memref<8x48xf32, #tpu.memory_space<vmem>>, %arg2: memref<48x1120xf32, #tpu.memory_space<vmem>>, %arg3: memref<1x1120xf32, #tpu.memory_space<vmem>>, %arg4: memref<1120x384xf32, #tpu.memory_space<vmem>>, %arg5: memref<1x384xf32, #tpu.memory_space<vmem>>, %arg6: memref<8x384xf32, #tpu.memory_space<vmem>>) attributes {dimension_semantics = [#tpu.dimension_semantics<parallel>], iteration_bounds = array<i64: 1>, scalar_prefetch = 0 : i64, scratch_operands = 0 : i64, tpu.core_type = #tpu.core_type<tc>, window_params = [{transform_indices = @transform_0, window_bounds = array<i64: 8, 48>}, {pipeline_mode = #tpu.pipeline_mode<synchronous>, transform_indices = @transform_1, window_bounds = array<i64: 48, 1120>}, {pipeline_mode = #tpu.pipeline_mode<synchronous>, transform_indices = @transform_2, window_bounds = array<i64: 1, 1120>}, {pipeline_mode = #tpu.pipeline_mode<synchronous>, transform_indices = @transform_3, window_bounds = array<i64: 1120, 384>}, {pipeline_mode = #tpu.pipeline_mode<synchronous>, transform_indices = @transform_4, window_bounds = array<i64: 1, 384>}, {transform_indices = @transform_5, window_bounds = array<i64: 8, 384>}]} {
    %c0 = arith.constant 0 : index
    %c0_0 = arith.constant 0 : index
    %0 = vector.load %arg1[%c0, %c0_0] : memref<8x48xf32, #tpu.memory_space<vmem>>, vector<8x48xf32>
    %c0_1 = arith.constant 0 : index
    %c0_2 = arith.constant 0 : index
    %1 = vector.load %arg2[%c0_1, %c0_2] : memref<48x1120xf32, #tpu.memory_space<vmem>>, vector<48x1120xf32>
    %cst = arith.constant dense<0.000000e+00> : vector<8x1120xf32>
    %2 = tpu.matmul %0, %1, %cst {dimension_numbers = #tpu.dot_dimension_numbers<[1], [0], [0], [1], [0, 0, 1, 1], [], []>} : vector<8x48xf32>, vector<48x1120xf32>, vector<8x1120xf32> -> vector<8x1120xf32>
    %c0_3 = arith.constant 0 : index
    %c0_4 = arith.constant 0 : index
    %3 = vector.load %arg3[%c0_3, %c0_4] : memref<1x1120xf32, #tpu.memory_space<vmem>>, vector<1x1120xf32>
    %4 = vector.broadcast %3 : vector<1x1120xf32> to vector<8x1120xf32>
    %5 = arith.addf %2, %4 : vector<8x1120xf32>
    %cst_5 = arith.constant 0.000000e+00 : f32
    %6 = vector.broadcast %cst_5 : f32 to vector<8x1120xf32>
    %7 = arith.maximumf %5, %6 : vector<8x1120xf32>
    %c0_6 = arith.constant 0 : index
    %c0_7 = arith.constant 0 : index
    %8 = vector.load %arg4[%c0_6, %c0_7] : memref<1120x384xf32, #tpu.memory_space<vmem>>, vector<1120x384xf32>
    %cst_8 = arith.constant dense<0.000000e+00> : vector<8x384xf32>
    %9 = tpu.matmul %7, %8, %cst_8 {dimension_numbers = #tpu.dot_dimension_numbers<[1], [0], [0], [1], [0, 0, 1, 1], [], []>} : vector<8x1120xf32>, vector<1120x384xf32>, vector<8x384xf32> -> vector<8x384xf32>
    %c0_9 = arith.constant 0 : index
    %c0_10 = arith.constant 0 : index
    %10 = vector.load %arg5[%c0_9, %c0_10] : memref<1x384xf32, #tpu.memory_space<vmem>>, vector<1x384xf32>
    %11 = vector.broadcast %10 : vector<1x384xf32> to vector<8x384xf32>
    %12 = arith.addf %9, %11 : vector<8x384xf32>
    %c0_11 = arith.constant 0 : index
    %c0_12 = arith.constant 0 : index
    %13 = vector.load %arg6[%c0_11, %c0_12] : memref<8x384xf32, #tpu.memory_space<vmem>>, vector<8x384xf32>
    tpu.vector_store %arg6[%c0_11, %c0_12], %12 {strides = array<i32>} : memref<8x384xf32, #tpu.memory_space<vmem>>, vector<8x384xf32>,
    return
  }
  func.func @transform_0(%arg0: i32) -> (i32, i32) {
    %c0_i32 = arith.constant 0 : i32
    %c0_i32_0 = arith.constant 0 : i32
    return %arg0, %c0_i32 : i32, i32
  }
  func.func @transform_1(%arg0: i32) -> (i32, i32) {
    %c0_i32 = arith.constant 0 : i32
    %c0_i32_0 = arith.constant 0 : i32
    %c0_i32_1 = arith.constant 0 : i32
    return %c0_i32, %c0_i32_0 : i32, i32
  }
  func.func @transform_2(%arg0: i32) -> (i32, i32) {
    %c0_i32 = arith.constant 0 : i32
    %c0_i32_0 = arith.constant 0 : i32
    %c0_i32_1 = arith.constant 0 : i32
    return %c0_i32, %c0_i32_0 : i32, i32
  }
  func.func @transform_3(%arg0: i32) -> (i32, i32) {
    %c0_i32 = arith.constant 0 : i32
    %c0_i32_0 = arith.constant 0 : i32
    %c0_i32_1 = arith.constant 0 : i32
    return %c0_i32, %c0_i32_0 : i32, i32
  }
  func.func @transform_4(%arg0: i32) -> (i32, i32) {
    %c0_i32 = arith.constant 0 : i32
    %c0_i32_0 = arith.constant 0 : i32
    %c0_i32_1 = arith.constant 0 : i32
    return %c0_i32, %c0_i32_0 : i32, i32
  }
  func.func @transform_5(%arg0: i32) -> (i32, i32) {
    %c0_i32 = arith.constant 0 : i32
    %c0_i32_0 = arith.constant 0 : i32
    return %arg0, %c0_i32 : i32, i32
  }
}

</mosaic_0001>

<bundles_post_ra>
// kernel: _forward.1
= control target key start
LH: loop header
LB: loop body
LE: loop exit
PB: predicated region body
PF: predicated region fallthrough
CT: control target
= control target key end

     0   :  { %10 = vsyncpa [#allocation3], 0  ;;  %s1599_s0 = inlined_call_operand.vmem [shape: f32[8,48], index: 0, kind: input, shape index: {}]   ;;  %s1600_s1 = inlined_call_operand.hbm [shape: f32[48,1120], index: 1, kind: input, shape index: {}]   ;;  %s1601_s2 = inlined_call_operand.hbm [shape: f32[1,1120], index: 2, kind: input, shape index: {}]   ;;  %s1602_s3 = inlined_call_operand.hbm [shape: f32[1120,384], index: 3, kind: input, shape index: {}]   ;;  %s1603_s4 = inlined_call_operand.hbm [shape: f32[1,384], index: 4, kind: input, shape index: {}]   ;;  %s1604_s5 = inlined_call_operand.vmem [shape: f32[8,384], index: 5, kind: output, shape index: {}]  }
   0x1   :  { %11 = vsyncpa [#allocation5], 0  ;;  %s33_s20 = sshll.u32 %s1601_s2, 4  ;;  %s34_s20 = int_to_ptr.hbm [resolvable:$true] %s33_s20 }
   0x2   :  { %12 = vsyncpa [#allocation8], 0  ;;  %s1454_s21 = smov [#allocation4]   ;;  %s19_s25 = sshll.u32 %s1600_s1, 4  ;;  %s20_s25 = int_to_ptr.hbm [resolvable:$true] %s19_s25 }
   0x3   :  { %s35_s22 = sshll.u32 %s1454_s21, 4  ;;  %s1455_s26 = smov [#allocation2]   ;;  %s36_s22 = int_to_ptr.vmem [resolvable:$true] %s35_s22 }
   0x4   :  { %38 = dma.hbm_to_vmem [thread:$0]  %s34_s20, 144, %s36_s22, [#allocation5]  }
   0x5   :  { %s21_s27 = sshll.u32 %s1455_s26, 4  ;;  %s1456_s28 = smov 1152   ;;  %s22_s27 = int_to_ptr.vmem [resolvable:$true] %s21_s27 }
   0x6   :  { %s1457_s29 = smov 72   ;;  %s43_s2 = sshll.u32 %s1602_s3, 4  ;;  %s44_s2 = int_to_ptr.hbm [resolvable:$true] %s43_s2 }
   0x7   :  { %27 = dma.hbm_to_vmem [thread:$0]  %s20_s25, 6912, %s22_s27, [#allocation3], %s1456_s28, %s1456_s28, %s1457_s29  }
   0x8   :  { %s1458_s7 = smov [#allocation6]   ;;  %s57_s1 = sshll.u32 %s1603_s4, 4  ;;  %s58_s1 = int_to_ptr.hbm [resolvable:$true] %s57_s1 }
   0x9   :  { %s45_s8 = sshll.u32 %s1458_s7, 4  ;;  %s1459_s11 = smov 384   ;;  %s46_s8 = int_to_ptr.vmem [resolvable:$true] %s45_s8 }
   0xa   :  { %s1460_s12 = smov 24   ;;  %s1461_s13 = smov [#allocation7]  }
   0xb   :  { %51 = dma.hbm_to_vmem [thread:$0]  %s44_s2, 53760, %s46_s8, [#allocation5], %s1459_s11, %s1459_s11, %s1460_s12  }
   0xc   :  { %s59_s14 = sshll.u32 %s1461_s13, 4  ;;  %s60_s14 = int_to_ptr.vmem [resolvable:$true] %s59_s14 }
   0xd   :  { %62 = dma.hbm_to_vmem [thread:$0]  %s58_s1, 48, %s60_s14, [#allocation8]  }
   0xe   :  { %1448 = dma.done.wait [#allocation3], 6912  }
   0xf   :  { %1449 = vsyncadd [#allocation3], 4294960384 }
  0x10   :  { %1450 = dma.done.wait [#allocation5], 53904  }
  0x11   :  { %1451 = vsyncadd [#allocation5], 4294913392 }
  0x12   :  { %1452 = dma.done.wait [#allocation8], 48  }
  0x13   :  { %1453 = vsyncadd [#allocation8], 4294967248  ;;  %v125_v0 = vld [vmem:[#allocation2 + $0x168] sm:$0xff]  ;;  %v126_v1 = vld [vmem:[#allocation2 + $0x170] sm:$0xff]  ;;  %vm156_vm0 = vcmask 392192   ;;  %vm777_vm1 = vcmask 785408  }
  0x14   :  { %v127_v2 = vld [vmem:[#allocation2 + $0x178] sm:$0xff]  ;;  %170 = vmatpush.msra.mxu0 %v125_v0  ;;  %190 = vmatpush.msra.mxu1 %v126_v1  ;;  %v128_v3 = vld [vmem:[#allocation2 + $0x180] sm:$0xff]  ;;  %v117_v5 = vld [vmem:[#allocation2 + $0x128] sm:$0xff] }
  0x15   :  { %v116_v4 = vld [vmem:[#allocation2 + $0x120] sm:$0xff]  ;;  %210 = vmatpush.msra.mxu2 %v127_v2  ;;  %230 = vmatpush.msra.mxu3 %v128_v3  ;;  %v118_v6 = vld [vmem:[#allocation2 + $0x130] sm:$0xff]  ;;  %v119_v7 = vld [vmem:[#allocation2 + $0x138] sm:$0xff] }
  0x16   :  { %v107_v8 = vld [vmem:[#allocation2 + $0xd8] sm:$0xff]  ;;  %171 = vmatpush.msra.mxu0 %v116_v4  ;;  %191 = vmatpush.msra.mxu1 %v117_v5  ;;  %v108_v9 = vld [vmem:[#allocation2 + $0xe0] sm:$0xff]  ;;  %v109_v10 = vld [vmem:[#allocation2 + $0xe8] sm:$0xff] }
  0x17   :  { %v110_v11 = vld [vmem:[#allocation2 + $0xf0] sm:$0xff]  ;;  %211 = vmatpush.msra.mxu2 %v118_v6  ;;  %231 = vmatpush.msra.mxu3 %v119_v7  ;;  %v99_v13 = vld [vmem:[#allocation2 + $0x98] sm:$0xff]  ;;  %v100_v14 = vld [vmem:[#allocation2 + $0xa0] sm:$0xff] }
  0x18   :  { %v98_v12 = vld [vmem:[#allocation2 + $0x90] sm:$0xff]  ;;  %172 = vmatpush.msra.mxu0 %v107_v8  ;;  %192 = vmatpush.msra.mxu1 %v108_v9  ;;  %v101_v15 = vld [vmem:[#allocation2 + $0xa8] sm:$0xff]  ;;  %v91_v18 = vld [vmem:[#allocation2 + $0x58] sm:$0xff] }
  0x19   :  { %212 = vmatpush.msra.mxu2 %v109_v10  ;;  %232 = vmatpush.msra.mxu3 %v110_v11  ;;  %v89_v16 = vld [vmem:[#allocation2 + $0x48] sm:$0xff]  ;;  %v90_v17 = vld [vmem:[#allocation2 + $0x50] sm:$0xff]  ;;  %v92_v19 = vld [vmem:[#allocation2 + $0x60] sm:$0xff] }
  0x1a   :  { %173 = vmatpush.msra.mxu0 %v98_v12  ;;  %193 = vmatpush.msra.mxu1 %v99_v13  ;;  %v80_v20 = vld [vmem:[#allocation2] sm:$0xff]  ;;  %v81_v21 = vld [vmem:[#allocation2 + $0x8] sm:$0xff]  ;;  %v82_v22 = vld [vmem:[#allocation2 + $0x10] sm:$0xff] }
  0x1b   :  { %213 = vmatpush.msra.mxu2 %v100_v14  ;;  %233 = vmatpush.msra.mxu3 %v101_v15  ;;  %v83_v23 = vld [vmem:[#allocation2 + $0x18] sm:$0xff]  ;;  %v1507_v24 = vld [vmem:[%s1599_s0] sm:$0xff]  ;;  %v130_v26 = vld [vmem:[#allocation2 + $0x190] sm:$0xff] }
  0x1c   :  { %174 = vmatpush.msra.mxu0 %v89_v16  ;;  %194 = vmatpush.msra.mxu1 %v90_v17  ;;  %v131_v25 = vld [vmem:[#allocation2 + $0x198] sm:$0xff]  ;;  %v129_v27 = vld [vmem:[#allocation2 + $0x188] sm:$0xff]  ;;  %v132_v28 = vld [vmem:[#allocation2 + $0x1a0] sm:$0xff] }
  0x1d   :  { %214 = vmatpush.msra.mxu2 %v91_v18  ;;  %234 = vmatpush.msra.mxu3 %v92_v19  ;;  %v122_v29 = vld [vmem:[#allocation2 + $0x150] sm:$0xff]  ;;  %v121_v30 = vld [vmem:[#allocation2 + $0x148] sm:$0xff]  ;;  %v120_v31 = vld [vmem:[#allocation2 + $0x140] sm:$0xff] }
  0x1e   :  { %175 = vmatpush.msra.mxu0 %v80_v20  ;;  %195 = vmatpush.msra.mxu1 %v81_v21  ;;  %v123_v32 = vld [vmem:[#allocation2 + $0x158] sm:$0xff]  ;;  %v113_v33 = vld [vmem:[#allocation2 + $0x108] sm:$0xff]  ;;  %v112_v34 = vld [vmem:[#allocation2 + $0x100] sm:$0xff] }
  0x1f   :  { %215 = vmatpush.msra.mxu2 %v82_v22  ;;  %235 = vmatpush.msra.mxu3 %v83_v23  ;;  %v111_v35 = vld [vmem:[#allocation2 + $0xf8] sm:$0xff]  ;;  %v114_v36 = vld [vmem:[#allocation2 + $0x110] sm:$0xff]  ;;  %v104_v37 = vld [vmem:[#allocation2 + $0xc0] sm:$0xff] }
  0x20   :  { %1331 = vmatmul.msk.f32.vlgmr.msra.gmra.mxu0 %vm156_vm0, %v1507_v24  ;;  %1332 = vmatmul.msk.f32.vlgmr.msra.gmra.mxu1 %vm156_vm0, %v1507_v24  ;;  %v103_v38 = vld [vmem:[#allocation2 + $0xb8] sm:$0xff]  ;;  %v102_v39 = vld [vmem:[#allocation2 + $0xb0] sm:$0xff]  ;;  %v105_v40 = vld [vmem:[#allocation2 + $0xc8] sm:$0xff] }
  0x21   :  { %1333 = vmatmul.msk.f32.vlgmr.msra.gmra.mxu2 %vm156_vm0, %v1507_v24  ;;  %1334 = vmatmul.msk.f32.vlgmr.msra.gmra.mxu3 %vm156_vm0, %v1507_v24  ;;  %v95_v41 = vld [vmem:[#allocation2 + $0x78] sm:$0xff]  ;;  %v94_v42 = vld [vmem:[#allocation2 + $0x70] sm:$0xff]  ;;  %v93_v43 = vld [vmem:[#allocation2 + $0x68] sm:$0xff] }
  0x22   :  { %290 = vmatpush.msrb.mxu2 %v131_v25  ;;  %270 = vmatpush.msrb.mxu1 %v130_v26  ;;  %v96_v44 = vld [vmem:[#allocation2 + $0x80] sm:$0xff]  ;;  %v86_v45 = vld [vmem:[#allocation2 + $0x30] sm:$0xff]  ;;  %v85_v46 = vld [vmem:[#allocation2 + $0x28] sm:$0xff] }
  0x23   :  { %250 = vmatpush.msrb.mxu0 %v129_v27  ;;  %310 = vmatpush.msrb.mxu3 %v132_v28  ;;  %v84_v47 = vld [vmem:[#allocation2 + $0x20] sm:$0xff]  ;;  %v87_v48 = vld [vmem:[#allocation2 + $0x38] sm:$0xff]  ;;  %v133_v49 = vld [vmem:[#allocation2 + $0x1a8] sm:$0xff] }
  0x24   :  { %291 = vmatpush.msrb.mxu2 %v122_v29  ;;  %271 = vmatpush.msrb.mxu1 %v121_v30  ;;  %v394_v50 = vld [vmem:[#allocation6 + $0x168] sm:$0xff]  ;;  %v391_v54 = vld [vmem:[#allocation6 + $0x150] sm:$0xff]  ;;  %v115_v57 = vld [vmem:[#allocation2 + $0x118] sm:$0xff] }
  0x25   :  { %251 = vmatpush.msrb.mxu0 %v120_v31  ;;  %311 = vmatpush.msrb.mxu3 %v123_v32  ;;  %v442_v51 = vld [vmem:[#allocation6 + $0x2e8] sm:$0xff]  ;;  %v439_v55 = vld [vmem:[#allocation6 + $0x2d0] sm:$0xff]  ;;  %v388_v58 = vld [vmem:[#allocation6 + $0x138] sm:$0xff] }
  0x26   :  { %292 = vmatpush.msrb.mxu2 %v113_v33  ;;  %272 = vmatpush.msrb.mxu1 %v112_v34  ;;  %v490_v52 = vld [vmem:[#allocation6 + $0x468] sm:$0xff]  ;;  %v487_v56 = vld [vmem:[#allocation6 + $0x450] sm:$0xff]  ;;  %v436_v59 = vld [vmem:[#allocation6 + $0x2b8] sm:$0xff] }
  0x27   :  { %252 = vmatpush.msrb.mxu0 %v111_v35  ;;  %312 = vmatpush.msrb.mxu3 %v114_v36  ;;  %v124_v53 = vld [vmem:[#allocation2 + $0x160] sm:$0xff]  ;;  %v484_v60 = vld [vmem:[#allocation6 + $0x438] sm:$0xff]  ;;  %v97_v1 = vld [vmem:[#allocation2 + $0x88] sm:$0xff] }
  0x28   :  { %293 = vmatpush.msrb.mxu2 %v104_v37  ;;  %273 = vmatpush.msrb.mxu1 %v103_v38  ;;  %v106_v61 = vld [vmem:[#allocation2 + $0xd0] sm:$0xff]  ;;  %v385_v62 = vld [vmem:[#allocation6 + $0x120] sm:$0xff]  ;;  %v382_v2 = vld [vmem:[#allocation6 + $0x108] sm:$0xff] }
  0x29   :  { %253 = vmatpush.msrb.mxu0 %v102_v39  ;;  %313 = vmatpush.msrb.mxu3 %v105_v40  ;;  %v433_v63 = vld [vmem:[#allocation6 + $0x2a0] sm:$0xff]  ;;  %v430_v3 = vld [vmem:[#allocation6 + $0x288] sm:$0xff]  ;;  %v379_v6 = vld [vmem:[#allocation6 + $0xf0] sm:$0xff] }
  0x2a   :  { %294 = vmatpush.msrb.mxu2 %v95_v41  ;;  %274 = vmatpush.msrb.mxu1 %v94_v42  ;;  %v481_v0 = vld [vmem:[#allocation6 + $0x420] sm:$0xff]  ;;  %v478_v4 = vld [vmem:[#allocation6 + $0x408] sm:$0xff]  ;;  %v427_v7 = vld [vmem:[#allocation6 + $0x270] sm:$0xff] }
  0x2b   :  { %254 = vmatpush.msrb.mxu0 %v93_v43  ;;  %314 = vmatpush.msrb.mxu3 %v96_v44  ;;  %v88_v5 = vld [vmem:[#allocation2 + $0x40] sm:$0xff]  ;;  %v376_v9 = vld [vmem:[#allocation6 + $0xd8] sm:$0xff]  ;;  %v475_v11 = vld [vmem:[#allocation6 + $0x3f0] sm:$0xff] }
  0x2c   :  { %295 = vmatpush.msrb.mxu2 %v86_v45  ;;  %275 = vmatpush.msrb.mxu1 %v85_v46  ;;  %v538_v8 = vld [vmem:[#allocation6 + $0x5e8] sm:$0xff]  ;;  %v424_v10 = vld [vmem:[#allocation6 + $0x258] sm:$0xff]  ;;  %v535_v12 = vld [vmem:[#allocation6 + $0x5d0] sm:$0xff] }
  0x2d   :  { %1337 = vmatmul.msk.f32.vlgmr.msrb.gmra.mxu2 %vm156_vm0, %v1507_v24  ;;  %1336 = vmatmul.msk.f32.vlgmr.msrb.gmra.mxu1 %vm156_vm0, %v1507_v24  ;;  %v373_v13 = vld [vmem:[#allocation6 + $0xc0] sm:$0xff]  ;;  %v472_v15 = vld [vmem:[#allocation6 + $0x3d8] sm:$0xff]  ;;  %v370_v17 = vld [vmem:[#allocation6 + $0xa8] sm:$0xff] }
  0x2e   :  { %255 = vmatpush.msrb.mxu0 %v84_v47  ;;  %315 = vmatpush.msrb.mxu3 %v87_v48  ;;  %v421_v14 = vld [vmem:[#allocation6 + $0x240] sm:$0xff]  ;;  %v532_v16 = vld [vmem:[#allocation6 + $0x5b8] sm:$0xff]  ;;  %v418_v18 = vld [vmem:[#allocation6 + $0x228] sm:$0xff] }
  0x2f   :  { %1335 = vmatmul.msk.f32.vlgmr.msrb.gmra.mxu0 %vm156_vm0, %v1507_v24  ;;  %1338 = vmatmul.msk.f32.vlgmr.msrb.gmra.mxu3 %vm156_vm0, %v1507_v24  ;;  %v469_v19 = vld [vmem:[#allocation6 + $0x3c0] sm:$0xff]  ;;  %v367_v21 = vld [vmem:[#allocation6 + $0x90] sm:$0xff]  ;;  %v466_v23 = vld [vmem:[#allocation6 + $0x3a8] sm:$0xff] }
  0x30   :  { %330 = vmatpush.msra.mxu0 %v133_v49  ;;  %781 = vmatpush.msra.mxu1 %v394_v50  ;;  %v529_v20 = vld [vmem:[#allocation6 + $0x5a0] sm:$0xff]  ;;  %v415_v22 = vld [vmem:[#allocation6 + $0x210] sm:$0xff]  ;;  %v364_v25 = vld [vmem:[#allocation6 + $0x78] sm:$0xff] }
  0x31   :  { %801 = vmatpush.msra.mxu2 %v442_v51  ;;  %821 = vmatpush.msra.mxu3 %v490_v52  ;;  %v412_v26 = vld [vmem:[#allocation6 + $0x1f8] sm:$0xff]  ;;  %v463_v27 = vld [vmem:[#allocation6 + $0x390] sm:$0xff]  ;;  %v361_v29 = vld [vmem:[#allocation6 + $0x60] sm:$0xff] }
  0x32   :  { %331 = vmatpush.msra.mxu0 %v124_v53  ;;  %782 = vmatpush.msra.mxu1 %v391_v54  ;;  %v523_v28 = vld [vmem:[#allocation6 + $0x570] sm:$0xff]  ;;  %v409_v30 = vld [vmem:[#allocation6 + $0x1e0] sm:$0xff]  ;;  %v460_v31 = vld [vmem:[#allocation6 + $0x378] sm:$0xff] }
  0x33   :  { %802 = vmatpush.msra.mxu2 %v439_v55  ;;  %822 = vmatpush.msra.mxu3 %v487_v56  ;;  %v520_v32 = vld [vmem:[#allocation6 + $0x558] sm:$0xff]  ;;  %v358_v33 = vld [vmem:[#allocation6 + $0x48] sm:$0xff]  ;;  %v457_v35 = vld [vmem:[#allocation6 + $0x360] sm:$0xff] }
  0x34   :  { %332 = vmatpush.msra.mxu0 %v115_v57  ;;  %783 = vmatpush.msra.mxu1 %v388_v58  ;;  %v406_v34 = vld [vmem:[#allocation6 + $0x1c8] sm:$0xff]  ;;  %v517_v36 = vld [vmem:[#allocation6 + $0x540] sm:$0xff]  ;;  %v355_v37 = vld [vmem:[#allocation6 + $0x30] sm:$0xff] }
  0x35   :  { %803 = vmatpush.msra.mxu2 %v436_v59  ;;  %823 = vmatpush.msra.mxu3 %v484_v60  ;;  %v403_v38 = vld [vmem:[#allocation6 + $0x1b0] sm:$0xff]  ;;  %v454_v39 = vld [vmem:[#allocation6 + $0x348] sm:$0xff]  ;;  %v352_v41 = vld [vmem:[#allocation6 + $0x18] sm:$0xff] }
  0x36   :  { %333 = vmatpush.msra.mxu0 %v106_v61  ;;  %784 = vmatpush.msra.mxu1 %v385_v62  ;;  %v514_v40 = vld [vmem:[#allocation6 + $0x528] sm:$0xff]  ;;  %v400_v42 = vld [vmem:[#allocation6 + $0x198] sm:$0xff]  ;;  %v451_v43 = vld [vmem:[#allocation6 + $0x330] sm:$0xff] }
  0x37   :  { %804 = vmatpush.msra.mxu2 %v433_v63  ;;  %824 = vmatpush.msra.mxu3 %v481_v0  ;;  %v511_v44 = vld [vmem:[#allocation6 + $0x510] sm:$0xff]  ;;  %v349_v45 = vld [vmem:[#allocation6] sm:$0xff]  ;;  %v586_v47 = vld [vmem:[#allocation6 + $0x768] sm:$0xff] }
  0x38   :  { %334 = vmatpush.msra.mxu0 %v97_v1  ;;  %785 = vmatpush.msra.mxu1 %v382_v2  ;;  %v397_v46 = vld [vmem:[#allocation6 + $0x180] sm:$0xff]  ;;  %v508_v48 = vld [vmem:[#allocation6 + $0x4f8] sm:$0xff]  ;;  %v634_v49 = vld [vmem:[#allocation6 + $0x8e8] sm:$0xff] }
  0x39   :  { %805 = vmatpush.msra.mxu2 %v430_v3  ;;  %825 = vmatpush.msra.mxu3 %v478_v4  ;;  %v583_v50 = vld [vmem:[#allocation6 + $0x750] sm:$0xff]  ;;  %v448_v51 = vld [vmem:[#allocation6 + $0x318] sm:$0xff]  ;;  %v505_v52 = vld [vmem:[#allocation6 + $0x4e0] sm:$0xff] }
  0x3a   :  { %335 = vmatpush.msra.mxu0 %v88_v5  ;;  %786 = vmatpush.msra.mxu1 %v379_v6  ;;  %v631_v53 = vld [vmem:[#allocation6 + $0x8d0] sm:$0xff]  ;;  %v580_v54 = vld [vmem:[#allocation6 + $0x738] sm:$0xff]  ;;  %v445_v55 = vld [vmem:[#allocation6 + $0x300] sm:$0xff] }
  0x3b   :  { %1339 = vmatmul.msk.f32.vlgmr.msra.gmra.mxu0 %vm156_vm0, %v1507_v24  ;;  %806 = vmatpush.msra.mxu2 %v427_v7  ;;  %v526_v24 = vld [vmem:[#allocation6 + $0x588] sm:$0xff]  ;;  %v628_v57 = vld [vmem:[#allocation6 + $0x8b8] sm:$0xff]  ;;  %v577_v58 = vld [vmem:[#allocation6 + $0x720] sm:$0xff] }
  0x3c   :  { %841 = vmatpush.msrb.mxu0 %v538_v8  ;;  %787 = vmatpush.msra.mxu1 %v376_v9  ;;  %v502_v56 = vld [vmem:[#allocation6 + $0x4c8] sm:$0xff]  ;;  %v499_v60 = vld [vmem:[#allocation6 + $0x4b0] sm:$0xff]  ;;  %v625_v61 = vld [vmem:[#allocation6 + $0x8a0] sm:$0xff] }
  0x3d   :  { %807 = vmatpush.msra.mxu2 %v424_v10  ;;  %826 = vmatpush.msra.mxu3 %v475_v11  ;;  %v682_v59 = vld [vmem:[#allocation6 + $0xa68] sm:$0xff]  ;;  %v679_v63 = vld [vmem:[#allocation6 + $0xa50] sm:$0xff]  ;;  %v496_v0 = vld [vmem:[#allocation6 + $0x498] sm:$0xff] }
  0x3e   :  { %842 = vmatpush.msrb.mxu0 %v535_v12  ;;  %788 = vmatpush.msra.mxu1 %v373_v13  ;;  %v574_v62 = vld [vmem:[#allocation6 + $0x708] sm:$0xff]  ;;  %v571_v2 = vld [vmem:[#allocation6 + $0x6f0] sm:$0xff]  ;;  %v676_v3 = vld [vmem:[#allocation6 + $0xa38] sm:$0xff] }
  0x3f   :  { %808 = vmatpush.msra.mxu2 %v421_v14  ;;  %827 = vmatpush.msra.mxu3 %v472_v15  ;;  %v622_v1 = vld [vmem:[#allocation6 + $0x888] sm:$0xff]  ;;  %v493_v4 = vld [vmem:[#allocation6 + $0x480] sm:$0xff]  ;;  %v619_v5 = vld [vmem:[#allocation6 + $0x870] sm:$0xff] }
  0x40   :  { %843 = vmatpush.msrb.mxu0 %v532_v16  ;;  %789 = vmatpush.msra.mxu1 %v370_v17  ;;  %v730_v6 = vld [vmem:[#allocation6 + $0xbe8] sm:$0xff]  ;;  %v568_v7 = vld [vmem:[#allocation6 + $0x6d8] sm:$0xff]  ;;  %v673_v9 = vld [vmem:[#allocation6 + $0xa20] sm:$0xff] }
  0x41   :  { %809 = vmatpush.msra.mxu2 %v418_v18  ;;  %828 = vmatpush.msra.mxu3 %v469_v19  ;;  %v616_v8 = vld [vmem:[#allocation6 + $0x858] sm:$0xff]  ;;  %v727_v10 = vld [vmem:[#allocation6 + $0xbd0] sm:$0xff]  ;;  %v565_v11 = vld [vmem:[#allocation6 + $0x6c0] sm:$0xff] }
  0x42   :  { %844 = vmatpush.msrb.mxu0 %v529_v20  ;;  %790 = vmatpush.msra.mxu1 %v367_v21  ;;  %v613_v12 = vld [vmem:[#allocation6 + $0x840] sm:$0xff]  ;;  %v670_v13 = vld [vmem:[#allocation6 + $0xa08] sm:$0xff]  ;;  %v724_v14 = vld [vmem:[#allocation6 + $0xbb8] sm:$0xff] }
  0x43   :  { %810 = vmatpush.msra.mxu2 %v415_v22  ;;  %829 = vmatpush.msra.mxu3 %v466_v23  ;;  %v562_v15 = vld [vmem:[#allocation6 + $0x6a8] sm:$0xff]  ;;  %v667_v17 = vld [vmem:[#allocation6 + $0x9f0] sm:$0xff]  ;;  %v721_v18 = vld [vmem:[#allocation6 + $0xba0] sm:$0xff] }
  0x44   :  { %845 = vmatpush.msrb.mxu0 %v526_v24  ;;  %791 = vmatpush.msra.mxu1 %v364_v25  ;;  %v610_v16 = vld [vmem:[#allocation6 + $0x828] sm:$0xff]  ;;  %v559_v19 = vld [vmem:[#allocation6 + $0x690] sm:$0xff]  ;;  %v664_v21 = vld [vmem:[#allocation6 + $0x9d8] sm:$0xff] }
  0x45   :  { %811 = vmatpush.msra.mxu2 %v412_v26  ;;  %830 = vmatpush.msra.mxu3 %v463_v27  ;;  %v607_v20 = vld [vmem:[#allocation6 + $0x810] sm:$0xff]  ;;  %v718_v22 = vld [vmem:[#allocation6 + $0xb88] sm:$0xff]  ;;  %v556_v23 = vld [vmem:[#allocation6 + $0x678] sm:$0xff] }
  0x46   :  { %846 = vmatpush.msrb.mxu0 %v523_v28  ;;  %792 = vmatpush.msra.mxu1 %v361_v29  ;;  %v604_v24 = vld [vmem:[#allocation6 + $0x7f8] sm:$0xff]  ;;  %v661_v25 = vld [vmem:[#allocation6 + $0x9c0] sm:$0xff]  ;;  %v715_v26 = vld [vmem:[#allocation6 + $0xb70] sm:$0xff] }
  0x47   :  { %812 = vmatpush.msra.mxu2 %v409_v30  ;;  %831 = vmatpush.msra.mxu3 %v460_v31  ;;  %v553_v27 = vld [vmem:[#allocation6 + $0x660] sm:$0xff]  ;;  %v658_v29 = vld [vmem:[#allocation6 + $0x9a8] sm:$0xff]  ;;  %v712_v30 = vld [vmem:[#allocation6 + $0xb58] sm:$0xff] }
  0x48   :  { %847 = vmatpush.msrb.mxu0 %v520_v32  ;;  %793 = vmatpush.msra.mxu1 %v358_v33  ;;  %v601_v28 = vld [vmem:[#allocation6 + $0x7e0] sm:$0xff]  ;;  %v550_v31 = vld [vmem:[#allocation6 + $0x648] sm:$0xff]  ;;  %v655_v33 = vld [vmem:[#allocation6 + $0x990] sm:$0xff] }
  0x49   :  { %813 = vmatpush.msra.mxu2 %v406_v34  ;;  %832 = vmatpush.msra.mxu3 %v457_v35  ;;  %v598_v32 = vld [vmem:[#allocation6 + $0x7c8] sm:$0xff]  ;;  %v709_v34 = vld [vmem:[#allocation6 + $0xb40] sm:$0xff] }
  0x4a   :  { %848 = vmatpush.msrb.mxu0 %v517_v36  ;;  %794 = vmatpush.msra.mxu1 %v355_v37  ;;  %v706_v35 = vld [vmem:[#allocation6 + $0xb28] sm:$0xff]  ;;  %v703_v36 = vld [vmem:[#allocation6 + $0xb10] sm:$0xff] }
  0x4b   :  { %814 = vmatpush.msra.mxu2 %v403_v38  ;;  %833 = vmatpush.msra.mxu3 %v454_v39  ;;  %v547_v37 = vld [vmem:[#allocation6 + $0x630] sm:$0xff]  ;;  %v652_v39 = vld [vmem:[#allocation6 + $0x978] sm:$0xff] }
  0x4c   :  { %849 = vmatpush.msrb.mxu0 %v514_v40  ;;  %795 = vmatpush.msra.mxu1 %v352_v41  ;;  %v595_v38 = vld [vmem:[#allocation6 + $0x7b0] sm:$0xff]  ;;  %v700_v40 = vld [vmem:[#allocation6 + $0xaf8] sm:$0xff] }
  0x4d   :  { %815 = vmatpush.msra.mxu2 %v400_v42  ;;  %834 = vmatpush.msra.mxu3 %v451_v43  ;;  %v544_v41 = vld [vmem:[#allocation6 + $0x618] sm:$0xff]  ;;  %v649_v43 = vld [vmem:[#allocation6 + $0x960] sm:$0xff] }
  0x4e   :  { %850 = vmatpush.msrb.mxu0 %v511_v44  ;;  %796 = vmatpush.msra.mxu1 %v349_v45  ;;  %v592_v42 = vld [vmem:[#allocation6 + $0x798] sm:$0xff]  ;;  %v697_v44 = vld [vmem:[#allocation6 + $0xae0] sm:$0xff] }
  0x4f   :  { %816 = vmatpush.msra.mxu2 %v397_v46  ;;  %835 = vmatpush.msra.mxu3 %v448_v51  ;;  %v541_v45 = vld [vmem:[#allocation6 + $0x600] sm:$0xff]  ;;  %v640_v51 = vld [vmem:[#allocation6 + $0x918] sm:$0xff] }
  0x50   :  { %861 = vmatpush.msrb.mxu1 %v586_v47  ;;  %851 = vmatpush.msrb.mxu0 %v508_v48  ;;  %v589_v46 = vld [vmem:[#allocation6 + $0x780] sm:$0xff]  ;;  %v646_v47 = vld [vmem:[#allocation6 + $0x948] sm:$0xff] }
  0x51   :  { %881 = vmatpush.msrb.mxu2 %v634_v49  ;;  %836 = vmatpush.msra.mxu3 %v445_v55  ;;  %v694_v48 = vld [vmem:[#allocation6 + $0xac8] sm:$0xff]  ;;  %v643_v49 = vld [vmem:[#allocation6 + $0x930] sm:$0xff] }
  0x52   :  { %862 = vmatpush.msrb.mxu1 %v583_v50  ;;  %852 = vmatpush.msrb.mxu0 %v505_v52  ;;  %v691_v50 = vld [vmem:[#allocation6 + $0xab0] sm:$0xff]  ;;  %v688_v52 = vld [vmem:[#allocation6 + $0xa98] sm:$0xff] }
  0x53   :  { %882 = vmatpush.msrb.mxu2 %v631_v53  ;;  %901 = vmatpush.msrb.mxu3 %v682_v59  ;;  %v637_v53 = vld [vmem:[#allocation6 + $0x900] sm:$0xff]  ;;  %v1527_v55 = vld [vmem:[#allocation4] sm:$0xff] }
  0x54   :  { %863 = vmatpush.msrb.mxu1 %v580_v54  ;;  %853 = vmatpush.msrb.mxu0 %v502_v56  ;;  %v685_v54 = vld [vmem:[#allocation6 + $0xa80] sm:$0xff]  ;;  %v138_v56 = vperm.slane %v1527_v55, 0 }
  0x55   :  { %883 = vmatpush.msrb.mxu2 %v628_v57  ;;  %902 = vmatpush.msrb.mxu3 %v679_v63  ;;  %v139_v57 = vperm.slane %v1527_v55, 1 }
  0x56   :  { %864 = vmatpush.msrb.mxu1 %v577_v58  ;;  %854 = vmatpush.msrb.mxu0 %v499_v60 }
  0x57   :  { %884 = vmatpush.msrb.mxu2 %v625_v61  ;;  %903 = vmatpush.msrb.mxu3 %v676_v3  ;;  %v141_v3 = vperm.slane %v1527_v55, 3 }
  0x58   :  { %865 = vmatpush.msrb.mxu1 %v574_v62  ;;  %855 = vmatpush.msrb.mxu0 %v496_v0  ;;  %v766_v0 = vld [vmem:[#allocation6 + $0xd08] sm:$0xff] }
  0x59   :  { %885 = vmatpush.msrb.mxu2 %v622_v1  ;;  %904 = vmatpush.msrb.mxu3 %v673_v9  ;;  %v395_v1 = vld [vmem:[#allocation6 + $0x170] sm:$0xff]  ;;  %v389_v9 = vld [vmem:[#allocation6 + $0x140] sm:$0xff] }
  0x5a   :  { %866 = vmatpush.msrb.mxu1 %v571_v2  ;;  %856 = vmatpush.msrb.mxu0 %v493_v4  ;;  %v140_v2 = vperm.slane %v1527_v55, 2  ;;  %v763_v4 = vld [vmem:[#allocation6 + $0xcf0] sm:$0xff] }
  0x5b   :  { %886 = vmatpush.msrb.mxu2 %v619_v5  ;;  %905 = vmatpush.msrb.mxu3 %v670_v13  ;;  %v392_v5 = vld [vmem:[#allocation6 + $0x158] sm:$0xff] }
  0x5c   :  { %921 = vmatpush.msra.mxu0 %v730_v6  ;;  %867 = vmatpush.msrb.mxu1 %v568_v7 }
  0x5d   :  { %887 = vmatpush.msrb.mxu2 %v616_v8  ;;  %906 = vmatpush.msrb.mxu3 %v667_v17  ;;  %v760_v8 = vld [vmem:[#allocation6 + $0xcd8] sm:$0xff]  ;;  %v443_v17 = vld [vmem:[#allocation6 + $0x2f0] sm:$0xff] }
  0x5e   :  { %922 = vmatpush.msra.mxu0 %v727_v10  ;;  %868 = vmatpush.msrb.mxu1 %v565_v11 }
  0x5f   :  { %888 = vmatpush.msrb.mxu2 %v613_v12  ;;  %907 = vmatpush.msrb.mxu3 %v664_v21  ;;  %v142_v21 = vperm.slane %v1527_v55, 4 }
  0x60   :  { %923 = vmatpush.msra.mxu0 %v724_v14  ;;  %869 = vmatpush.msrb.mxu1 %v562_v15  ;;  %v757_v14 = vld [vmem:[#allocation6 + $0xcc0] sm:$0xff]  ;;  %v386_v15 = vld [vmem:[#allocation6 + $0x128] sm:$0xff] }
  0x61   :  { %889 = vmatpush.msrb.mxu2 %v610_v16  ;;  %908 = vmatpush.msrb.mxu3 %v661_v25  ;;  %v143_v16 = vperm.slane %v1527_v55, 5 }
  0x62   :  { %924 = vmatpush.msra.mxu0 %v721_v18  ;;  %870 = vmatpush.msrb.mxu1 %v559_v19  ;;  %v491_v18 = vld [vmem:[#allocation6 + $0x470] sm:$0xff]  ;;  %v754_v19 = vld [vmem:[#allocation6 + $0xca8] sm:$0xff] }
  0x63   :  { %890 = vmatpush.msrb.mxu2 %v607_v20  ;;  %909 = vmatpush.msrb.mxu3 %v658_v29  ;;  %v383_v20 = vld [vmem:[#allocation6 + $0x110] sm:$0xff]  ;;  %v485_v29 = vld [vmem:[#allocation6 + $0x440] sm:$0xff] }
  0x64   :  { %925 = vmatpush.msra.mxu0 %v718_v22  ;;  %871 = vmatpush.msrb.mxu1 %v556_v23  ;;  %v440_v23 = vld [vmem:[#allocation6 + $0x2d8] sm:$0xff] }
  0x65   :  { %891 = vmatpush.msrb.mxu2 %v604_v24  ;;  %910 = vmatpush.msrb.mxu3 %v655_v33  ;;  %v488_v24 = vld [vmem:[#allocation6 + $0x458] sm:$0xff]  ;;  %v144_v33 = vperm.slane %v1527_v55, 6 }
  0x66   :  { %926 = vmatpush.msra.mxu0 %v715_v26  ;;  %872 = vmatpush.msrb.mxu1 %v553_v27  ;;  %v751_v26 = vld [vmem:[#allocation6 + $0xc90] sm:$0xff]  ;;  %v380_v27 = vld [vmem:[#allocation6 + $0xf8] sm:$0xff] }
  0x67   :  { %892 = vmatpush.msrb.mxu2 %v601_v28  ;;  %911 = vmatpush.msrb.mxu3 %v652_v39  ;;  %v437_v28 = vld [vmem:[#allocation6 + $0x2c0] sm:$0xff] }
  0x68   :  { %927 = vmatpush.msra.mxu0 %v712_v30  ;;  %873 = vmatpush.msrb.mxu1 %v550_v31 }
  0x69   :  { %893 = vmatpush.msrb.mxu2 %v598_v32  ;;  %912 = vmatpush.msrb.mxu3 %v649_v43 }
  0x6a   :  { %928 = vmatpush.msra.mxu0 %v709_v34  ;;  %874 = vmatpush.msrb.mxu1 %v547_v37  ;;  %v748_v34 = vld [vmem:[#allocation6 + $0xc78] sm:$0xff]  ;;  %v482_v37 = vld [vmem:[#allocation6 + $0x428] sm:$0xff] }
  0x6b   :  { %894 = vmatpush.msrb.mxu2 %v595_v38  ;;  %913 = vmatpush.msrb.mxu3 %v646_v47  ;;  %v745_v38 = vld [vmem:[#allocation6 + $0xc60] sm:$0xff] }
  0x6c   :  { %929 = vmatpush.msra.mxu0 %v706_v35  ;;  %875 = vmatpush.msrb.mxu1 %v544_v41  ;;  %v377_v35 = vld [vmem:[#allocation6 + $0xe0] sm:$0xff]  ;;  %v374_v41 = vld [vmem:[#allocation6 + $0xc8] sm:$0xff] }
  0x6d   :  { %895 = vmatpush.msrb.mxu2 %v592_v42  ;;  %914 = vmatpush.msrb.mxu3 %v643_v49  ;;  %v431_v42 = vld [vmem:[#allocation6 + $0x290] sm:$0xff]  ;;  %v476_v49 = vld [vmem:[#allocation6 + $0x3f8] sm:$0xff] }
  0x6e   :  { %930 = vmatpush.msra.mxu0 %v703_v36  ;;  %876 = vmatpush.msrb.mxu1 %v541_v45  ;;  %v434_v36 = vld [vmem:[#allocation6 + $0x2a8] sm:$0xff] }
  0x6f   :  { %896 = vmatpush.msrb.mxu2 %v589_v46  ;;  %915 = vmatpush.msrb.mxu3 %v640_v51  ;;  %v742_v45 = vld [vmem:[#allocation6 + $0xc48] sm:$0xff]  ;;  %v371_v46 = vld [vmem:[#allocation6 + $0xb0] sm:$0xff]  ;;  %v145_v51 = vperm.slane %v1527_v55, 7 }
  0x70   :  { %931 = vmatpush.msra.mxu0 %v700_v40 }
  0x71   :  { %916 = vmatpush.msrb.mxu3 %v637_v53  ;;  %v425_v53 = vld [vmem:[#allocation6 + $0x260] sm:$0xff] }
  0x72   :  { %932 = vmatpush.msra.mxu0 %v697_v44  ;;  %v479_v44 = vld [vmem:[#allocation6 + $0x410] sm:$0xff] }
  0x74   :  { %933 = vmatpush.msra.mxu0 %v694_v48  ;;  %v428_v48 = vld [vmem:[#allocation6 + $0x278] sm:$0xff] }
  0x76   :  { %934 = vmatpush.msra.mxu0 %v691_v50  ;;  %v739_v50 = vld [vmem:[#allocation6 + $0xc30] sm:$0xff] }
  0x78   :  { %935 = vmatpush.msra.mxu0 %v688_v52  ;;  %v368_v52 = vld [vmem:[#allocation6 + $0x98] sm:$0xff] }
  0x7a   :  { %936 = vmatpush.msra.mxu0 %v685_v54 }
  0x9d   :  { %v177_v58 = vpop.f32.mrf.mxu0  ;;  %v197_v59 = vpop.f32.mrf.mxu1 }
  0x9e   :  { %v178_v60 = vadd.f32 %v177_v58, %v138_v56  ;;  %v198_v61 = vadd.f32 %v197_v59, %v139_v57  ;;  %v473_v56 = vld [vmem:[#allocation6 + $0x3e0] sm:$0xff]  ;;  %v736_v57 = vld [vmem:[#allocation6 + $0xc18] sm:$0xff] }
  0x9f   :  { %v1351_v58 = vld [vmem:[#allocation4 + $0x8] ss:$0 sm:$0xff]  ;;  %v365_v59 = vld [vmem:[#allocation6 + $0x80] sm:$0xff] }
  0xa0   :  { %v1531_v62 = vmax.f32 %v178_v60, 0.0  ;;  %v1533_v63 = vmax.f32 %v198_v61, 0.0  ;;  %v422_v60 = vld [vmem:[#allocation6 + $0x248] sm:$0xff] }
  0xa2   :  { %797 = vmatmul.f32.vlgmr.msra.gmra.mxu1 %v1531_v62  ;;  %817 = vmatmul.f32.vlgmr.msra.gmra.mxu2 %v1533_v63 }
  0xa3   :  { %945 = vmatpush.msra.mxu1 %v766_v0  ;;  %961 = vmatpush.msra.mxu2 %v395_v1  ;;  %v470_v0 = vld [vmem:[#allocation6 + $0x3c8] sm:$0xff]  ;;  %v733_v1 = vld [vmem:[#allocation6 + $0xc00] sm:$0xff] }
  0xa4   :  { %v217_v6 = vpop.f32.mrf.mxu2  ;;  %v237_v7 = vpop.f32.mrf.mxu3 }
  0xa5   :  { %v218_v10 = vadd.f32 %v217_v6, %v140_v2  ;;  %v238_v11 = vadd.f32 %v237_v7, %v141_v3  ;;  %946 = vmatpush.msra.mxu1 %v763_v4  ;;  %962 = vmatpush.msra.mxu2 %v392_v5  ;;  %v362_v2 = vld [vmem:[#allocation6 + $0x68] sm:$0xff]  ;;  %v419_v3 = vld [vmem:[#allocation6 + $0x230] sm:$0xff] }
  0xa6   :  { %v467_v5 = vld [vmem:[#allocation6 + $0x3b0] sm:$0xff] }
  0xa7   :  { %v1539_v12 = vmax.f32 %v218_v10, 0.0  ;;  %v1541_v13 = vmax.f32 %v238_v11, 0.0  ;;  %947 = vmatpush.msra.mxu1 %v760_v8  ;;  %963 = vmatpush.msra.mxu2 %v389_v9  ;;  %v539_v6 = vld [vmem:[#allocation6 + $0x5f0] sm:$0xff]  ;;  %v416_v8 = vld [vmem:[#allocation6 + $0x218] sm:$0xff] }
  0xa8   :  { %v359_v7 = vld [vmem:[#allocation6 + $0x50] sm:$0xff]  ;;  %v464_v10 = vld [vmem:[#allocation6 + $0x398] sm:$0xff] }
  0xa9   :  { %837 = vmatmul.f32.vlgmr.msra.gmra.mxu3 %v1539_v12  ;;  %857 = vmatmul.f32.vlgmr.msrb.gmra.mxu0 %v1541_v13  ;;  %v536_v11 = vld [vmem:[#allocation6 + $0x5d8] sm:$0xff] }
  0xaa   :  { %948 = vmatpush.msra.mxu1 %v757_v14  ;;  %964 = vmatpush.msra.mxu2 %v386_v15  ;;  %v277_v22 = vpop.f32.mrf.mxu1  ;;  %v356_v14 = vld [vmem:[#allocation6 + $0x38] sm:$0xff] }
  0xab   :  { %981 = vmatpush.msra.mxu3 %v443_v17  ;;  %1001 = vmatpush.msrb.mxu0 %v491_v18  ;;  %v278_v25 = vadd.f32 %v277_v22, %v143_v16  ;;  %v413_v16 = vld [vmem:[#allocation6 + $0x200] sm:$0xff]  ;;  %v350_v22 = vld [vmem:[#allocation6 + $0x8] sm:$0xff] }
  0xac   :  { %949 = vmatpush.msra.mxu1 %v754_v19  ;;  %965 = vmatpush.msra.mxu2 %v383_v20  ;;  %v257_v30 = vpop.f32.mrf.mxu0  ;;  %v461_v17 = vld [vmem:[#allocation6 + $0x380] sm:$0xff]  ;;  %v410_v20 = vld [vmem:[#allocation6 + $0x1e8] sm:$0xff] }
  0xad   :  { %v1547_v31 = vmax.f32 %v278_v25, 0.0  ;;  %982 = vmatpush.msra.mxu3 %v440_v23  ;;  %1002 = vmatpush.msrb.mxu0 %v488_v24  ;;  %v258_v32 = vadd.f32 %v257_v30, %v142_v21  ;;  %v353_v18 = vld [vmem:[#allocation6 + $0x20] sm:$0xff]  ;;  %v458_v21 = vld [vmem:[#allocation6 + $0x368] sm:$0xff]  ;;  %v407_v24 = vld [vmem:[#allocation6 + $0x1d0] sm:$0xff] }
  0xae   :  { %950 = vmatpush.msra.mxu1 %v751_v26  ;;  %966 = vmatpush.msra.mxu2 %v380_v27  ;;  %v533_v19 = vld [vmem:[#allocation6 + $0x5c0] sm:$0xff]  ;;  %v530_v23 = vld [vmem:[#allocation6 + $0x5a8] sm:$0xff]  ;;  %v455_v25 = vld [vmem:[#allocation6 + $0x350] sm:$0xff] }
  0xaf   :  { %983 = vmatpush.msra.mxu3 %v437_v28  ;;  %1003 = vmatpush.msrb.mxu0 %v485_v29  ;;  %v1550_v39 = vmax.f32 %v258_v32, 0.0  ;;  %v527_v26 = vld [vmem:[#allocation6 + $0x590] sm:$0xff]  ;;  %v404_v28 = vld [vmem:[#allocation6 + $0x1b8] sm:$0xff] }
  0xb0   :  { %v297_v40 = vpop.f32.mrf.mxu2  ;;  %897 = vmatmul.f32.vlgmr.msrb.gmra.mxu2 %v1547_v31  ;;  %951 = vmatpush.msra.mxu1 %v748_v34  ;;  %v587_v27 = vld [vmem:[#allocation6 + $0x770] sm:$0xff]  ;;  %v452_v29 = vld [vmem:[#allocation6 + $0x338] sm:$0xff]  ;;  %v449_v34 = vld [vmem:[#allocation6 + $0x320] sm:$0xff] }
  0xb1   :  { %v298_v43 = vadd.f32 %v297_v40, %v144_v33  ;;  %967 = vmatpush.msra.mxu2 %v377_v35  ;;  %984 = vmatpush.msra.mxu3 %v434_v36  ;;  %v524_v30 = vld [vmem:[#allocation6 + $0x578] sm:$0xff]  ;;  %v401_v33 = vld [vmem:[#allocation6 + $0x1a0] sm:$0xff]  ;;  %v518_v40 = vld [vmem:[#allocation6 + $0x548] sm:$0xff] }
  0xb2   :  { %1004 = vmatpush.msrb.mxu0 %v482_v37  ;;  %952 = vmatpush.msra.mxu1 %v745_v38  ;;  %v317_v54 = vpop.f32.mrf.mxu3  ;;  %v584_v32 = vld [vmem:[#allocation6 + $0x758] sm:$0xff]  ;;  %v521_v35 = vld [vmem:[#allocation6 + $0x560] sm:$0xff]  ;;  %v398_v37 = vld [vmem:[#allocation6 + $0x188] sm:$0xff] }
  0xb3   :  { %v1553_v47 = vmax.f32 %v298_v43, 0.0  ;;  %968 = vmatpush.msra.mxu2 %v374_v41  ;;  %985 = vmatpush.msra.mxu3 %v431_v42  ;;  %v318_v61 = vadd.f32 %v317_v54, %v145_v51  ;;  %v581_v36 = vld [vmem:[#allocation6 + $0x740] sm:$0xff]  ;;  %v446_v38 = vld [vmem:[#allocation6 + $0x308] sm:$0xff]  ;;  %v635_v42 = vld [vmem:[#allocation6 + $0x8f0] sm:$0xff] }
  0xb4   :  { %1005 = vmatpush.msrb.mxu0 %v479_v44  ;;  %877 = vmatmul.f32.vlgmr.msrb.gmra.mxu1 %v1550_v39  ;;  %v578_v41 = vld [vmem:[#allocation6 + $0x728] sm:$0xff]  ;;  %v683_v43 = vld [vmem:[#allocation6 + $0xa70] sm:$0xff]  ;;  %v629_v51 = vld [vmem:[#allocation6 + $0x8c0] sm:$0xff] }
  0xb5   :  { %953 = vmatpush.msra.mxu1 %v742_v45  ;;  %969 = vmatpush.msra.mxu2 %v371_v46  ;;  %v1558_v9 = vmax.f32 %v318_v61, 0.0  ;;  %v515_v44 = vld [vmem:[#allocation6 + $0x530] sm:$0xff]  ;;  %v632_v46 = vld [vmem:[#allocation6 + $0x8d8] sm:$0xff]  ;;  %v569_v54 = vld [vmem:[#allocation6 + $0x6e0] sm:$0xff] }
  0xb6   :  { %986 = vmatpush.msra.mxu3 %v428_v48  ;;  %1006 = vmatpush.msrb.mxu0 %v476_v49  ;;  %v575_v45 = vld [vmem:[#allocation6 + $0x710] sm:$0xff]  ;;  %v680_v48 = vld [vmem:[#allocation6 + $0xa58] sm:$0xff] }
  0xb7   :  { %917 = vmatmul.f32.vlgmr.msrb.gmra.mxu3 %v1553_v47  ;;  %954 = vmatpush.msra.mxu1 %v739_v50  ;;  %v512_v49 = vld [vmem:[#allocation6 + $0x518] sm:$0xff]  ;;  %v671_v61 = vld [vmem:[#allocation6 + $0xa10] sm:$0xff] }
  0xb8   :  { %970 = vmatpush.msra.mxu2 %v368_v52  ;;  %987 = vmatpush.msra.mxu3 %v425_v53  ;;  %v337_v55 = vpop.f32.mrf.mxu0  ;;  %v572_v50 = vld [vmem:[#allocation6 + $0x6f8] sm:$0xff]  ;;  %v677_v52 = vld [vmem:[#allocation6 + $0xa40] sm:$0xff] }
  0xb9   :  { %1007 = vmatpush.msrb.mxu0 %v473_v56  ;;  %955 = vmatpush.msra.mxu1 %v736_v57  ;;  %v338_v4 = vadd.f32 %v1351_v58, %v337_v55  ;;  %v509_v53 = vld [vmem:[#allocation6 + $0x500] sm:$0xff]  ;;  %v626_v56 = vld [vmem:[#allocation6 + $0x8a8] sm:$0xff]  ;;  %v563_v55 = vld [vmem:[#allocation6 + $0x6b0] sm:$0xff] }
  0xba   :  { %971 = vmatpush.msra.mxu2 %v365_v59  ;;  %988 = vmatpush.msra.mxu3 %v422_v60  ;;  %v674_v57 = vld [vmem:[#allocation6 + $0xa28] sm:$0xff]  ;;  %v623_v60 = vld [vmem:[#allocation6 + $0x890] sm:$0xff] }
  0xbb   :  { %1008 = vmatpush.msrb.mxu0 %v470_v0  ;;  %956 = vmatpush.msra.mxu1 %v733_v1  ;;  %v1560_v15 = vmax.f32 %v338_v4, 0.0  ;;  %v506_v58 = vld [vmem:[#allocation6 + $0x4e8] sm:$0xff]  ;;  %v503_v0 = vld [vmem:[#allocation6 + $0x4d0] sm:$0xff]  ;;  %v620_v1 = vld [vmem:[#allocation6 + $0x878] sm:$0xff] }
  0xbc   :  { %972 = vmatpush.msra.mxu2 %v362_v2  ;;  %989 = vmatpush.msra.mxu3 %v419_v3  ;;  %v566_v59 = vld [vmem:[#allocation6 + $0x6c8] sm:$0xff]  ;;  %v668_v2 = vld [vmem:[#allocation6 + $0x9f8] sm:$0xff] }
  0xbd   :  { %1009 = vmatpush.msrb.mxu0 %v467_v5  ;;  %1021 = vmatpush.msrb.mxu1 %v539_v6  ;;  %v500_v3 = vld [vmem:[#allocation6 + $0x4b8] sm:$0xff]  ;;  %v617_v5 = vld [vmem:[#allocation6 + $0x860] sm:$0xff] }
  0xbe   :  { %973 = vmatpush.msra.mxu2 %v359_v7  ;;  %990 = vmatpush.msra.mxu3 %v416_v8  ;;  %v560_v4 = vld [vmem:[#allocation6 + $0x698] sm:$0xff]  ;;  %v665_v6 = vld [vmem:[#allocation6 + $0x9e0] sm:$0xff] }
  0xbf   :  { %1010 = vmatpush.msrb.mxu0 %v464_v10  ;;  %1022 = vmatpush.msrb.mxu1 %v536_v11  ;;  %v497_v7 = vld [vmem:[#allocation6 + $0x4a0] sm:$0xff]  ;;  %v614_v10 = vld [vmem:[#allocation6 + $0x848] sm:$0xff] }
  0xc0   :  { %937 = vmatmul.f32.vlgmr.msra.gmra.mxu0 %v1558_v9  ;;  %974 = vmatpush.msra.mxu2 %v356_v14  ;;  %v557_v8 = vld [vmem:[#allocation6 + $0x680] sm:$0xff]  ;;  %v662_v11 = vld [vmem:[#allocation6 + $0x9c8] sm:$0xff] }
  0xc1   :  { %991 = vmatpush.msra.mxu3 %v413_v16  ;;  %1011 = vmatpush.msrb.mxu0 %v461_v17  ;;  %v494_v14 = vld [vmem:[#allocation6 + $0x488] sm:$0xff]  ;;  %v611_v17 = vld [vmem:[#allocation6 + $0x830] sm:$0xff] }
  0xc2   :  { %1340 = vmatmul.msk.f32.vlgmr.msra.gmra.mxu1 %vm777_vm1, %v1560_v15  ;;  %975 = vmatpush.msra.mxu2 %v353_v18  ;;  %v554_v16 = vld [vmem:[#allocation6 + $0x668] sm:$0xff]  ;;  %v659_v18 = vld [vmem:[#allocation6 + $0x9b0] sm:$0xff] }
  0xc3   :  { %1023 = vmatpush.msrb.mxu1 %v533_v19  ;;  %992 = vmatpush.msra.mxu3 %v410_v20  ;;  %v551_v19 = vld [vmem:[#allocation6 + $0x650] sm:$0xff] }
  0xc4   :  { %1012 = vmatpush.msrb.mxu0 %v458_v21  ;;  %976 = vmatpush.msra.mxu2 %v350_v22  ;;  %v731_v20 = vld [vmem:[#allocation6 + $0xbf0] sm:$0xff]  ;;  %v608_v21 = vld [vmem:[#allocation6 + $0x818] sm:$0xff] }
  0xc5   :  { %1024 = vmatpush.msrb.mxu1 %v530_v23  ;;  %993 = vmatpush.msra.mxu3 %v407_v24  ;;  %v656_v22 = vld [vmem:[#allocation6 + $0x998] sm:$0xff] }
  0xc6   :  { %1013 = vmatpush.msrb.mxu0 %v455_v25  ;;  %977 = vmatmul.f32.vlgmr.msra.gmra.mxu2 %v1531_v62  ;;  %v548_v23 = vld [vmem:[#allocation6 + $0x638] sm:$0xff]  ;;  %v605_v25 = vld [vmem:[#allocation6 + $0x800] sm:$0xff] }
  0xc7   :  { %1025 = vmatpush.msrb.mxu1 %v527_v26  ;;  %1041 = vmatpush.msrb.mxu2 %v587_v27  ;;  %v728_v24 = vld [vmem:[#allocation6 + $0xbd8] sm:$0xff]  ;;  %v653_v26 = vld [vmem:[#allocation6 + $0x980] sm:$0xff] }
  0xc8   :  { %994 = vmatpush.msra.mxu3 %v404_v28  ;;  %1014 = vmatpush.msrb.mxu0 %v452_v29  ;;  %v545_v27 = vld [vmem:[#allocation6 + $0x620] sm:$0xff]  ;;  %v602_v29 = vld [vmem:[#allocation6 + $0x7e8] sm:$0xff] }
  0xc9   :  { %1026 = vmatpush.msrb.mxu1 %v524_v30  ;;  %1042 = vmatpush.msrb.mxu2 %v584_v32  ;;  %v725_v28 = vld [vmem:[#allocation6 + $0xbc0] sm:$0xff]  ;;  %v650_v30 = vld [vmem:[#allocation6 + $0x968] sm:$0xff] }
  0xca   :  { %995 = vmatpush.msra.mxu3 %v401_v33  ;;  %1015 = vmatpush.msrb.mxu0 %v449_v34  ;;  %v542_v32 = vld [vmem:[#allocation6 + $0x608] sm:$0xff]  ;;  %v599_v34 = vld [vmem:[#allocation6 + $0x7d0] sm:$0xff] }
  0xcb   :  { %1027 = vmatpush.msrb.mxu1 %v521_v35  ;;  %1043 = vmatpush.msrb.mxu2 %v581_v36  ;;  %v722_v33 = vld [vmem:[#allocation6 + $0xba8] sm:$0xff]  ;;  %v647_v35 = vld [vmem:[#allocation6 + $0x950] sm:$0xff] }
  0xcc   :  { %996 = vmatpush.msra.mxu3 %v398_v37  ;;  %1016 = vmatpush.msrb.mxu0 %v446_v38  ;;  %v719_v36 = vld [vmem:[#allocation6 + $0xb90] sm:$0xff]  ;;  %v596_v38 = vld [vmem:[#allocation6 + $0x7b8] sm:$0xff] }
  0xcd   :  { %997 = vmatmul.f32.vlgmr.msra.gmra.mxu3 %v1533_v63  ;;  %1017 = vmatmul.f32.vlgmr.msrb.gmra.mxu0 %v1539_v12  ;;  %v767_v37 = vld [vmem:[#allocation6 + $0xd10] sm:$0xff] }
  0xce   :  { %1028 = vmatpush.msrb.mxu1 %v518_v40  ;;  %1044 = vmatpush.msrb.mxu2 %v578_v41  ;;  %v644_v40 = vld [vmem:[#allocation6 + $0x938] sm:$0xff] }
  0xcf   :  { %1061 = vmatpush.msrb.mxu3 %v635_v42  ;;  %1081 = vmatpush.msra.mxu0 %v683_v43  ;;  %v716_v41 = vld [vmem:[#allocation6 + $0xb78] sm:$0xff]  ;;  %v593_v43 = vld [vmem:[#allocation6 + $0x7a0] sm:$0xff] }
  0xd0   :  { %1029 = vmatpush.msrb.mxu1 %v515_v44  ;;  %1045 = vmatpush.msrb.mxu2 %v575_v45  ;;  %v764_v42 = vld [vmem:[#allocation6 + $0xcf8] sm:$0xff]  ;;  %v641_v44 = vld [vmem:[#allocation6 + $0x920] sm:$0xff] }
  0xd1   :  { %1062 = vmatpush.msrb.mxu3 %v632_v46  ;;  %1082 = vmatpush.msra.mxu0 %v680_v48  ;;  %v713_v45 = vld [vmem:[#allocation6 + $0xb60] sm:$0xff]  ;;  %v590_v48 = vld [vmem:[#allocation6 + $0x788] sm:$0xff] }
  0xd2   :  { %1030 = vmatpush.msrb.mxu1 %v512_v49  ;;  %1046 = vmatpush.msrb.mxu2 %v572_v50  ;;  %v761_v46 = vld [vmem:[#allocation6 + $0xce0] sm:$0xff]  ;;  %v638_v49 = vld [vmem:[#allocation6 + $0x908] sm:$0xff] }
  0xd3   :  { %1063 = vmatpush.msrb.mxu3 %v629_v51  ;;  %1083 = vmatpush.msra.mxu0 %v677_v52  ;;  %v710_v50 = vld [vmem:[#allocation6 + $0xb48] sm:$0xff]  ;;  %v396_v52 = vld [vmem:[#allocation6 + $0x178] sm:$0xff] }
  0xd4   :  { %1031 = vmatpush.msrb.mxu1 %v509_v53  ;;  %1047 = vmatpush.msrb.mxu2 %v569_v54  ;;  %v758_v51 = vld [vmem:[#allocation6 + $0xcc8] sm:$0xff]  ;;  %v444_v53 = vld [vmem:[#allocation6 + $0x2f8] sm:$0xff]  ;;  %v707_v54 = vld [vmem:[#allocation6 + $0xb30] sm:$0xff] }
  0xd5   :  { %1064 = vmatpush.msrb.mxu3 %v626_v56  ;;  %1084 = vmatpush.msra.mxu0 %v674_v57  ;;  %v755_v56 = vld [vmem:[#allocation6 + $0xcb0] sm:$0xff]  ;;  %v393_v57 = vld [vmem:[#allocation6 + $0x160] sm:$0xff] }
  0xd6   :  { %1032 = vmatpush.msrb.mxu1 %v506_v58  ;;  %1048 = vmatpush.msrb.mxu2 %v566_v59  ;;  %v441_v58 = vld [vmem:[#allocation6 + $0x2e0] sm:$0xff]  ;;  %v704_v59 = vld [vmem:[#allocation6 + $0xb18] sm:$0xff] }
  0xd7   :  { %1065 = vmatpush.msrb.mxu3 %v623_v60  ;;  %1085 = vmatpush.msra.mxu0 %v671_v61  ;;  %v752_v60 = vld [vmem:[#allocation6 + $0xc98] sm:$0xff]  ;;  %v390_v61 = vld [vmem:[#allocation6 + $0x148] sm:$0xff] }
  0xd8   :  { %1033 = vmatpush.msrb.mxu1 %v503_v0  ;;  %1049 = vmatpush.msrb.mxu2 %v563_v55  ;;  %v438_v0 = vld [vmem:[#allocation6 + $0x2c8] sm:$0xff]  ;;  %v701_v55 = vld [vmem:[#allocation6 + $0xb00] sm:$0xff] }
  0xd9   :  { %1066 = vmatpush.msrb.mxu3 %v620_v1  ;;  %1086 = vmatpush.msra.mxu0 %v668_v2  ;;  %v749_v1 = vld [vmem:[#allocation6 + $0xc80] sm:$0xff]  ;;  %v387_v2 = vld [vmem:[#allocation6 + $0x130] sm:$0xff] }
  0xda   :  { %1034 = vmatpush.msrb.mxu1 %v500_v3  ;;  %1050 = vmatpush.msrb.mxu2 %v560_v4  ;;  %v435_v3 = vld [vmem:[#allocation6 + $0x2b0] sm:$0xff]  ;;  %v698_v4 = vld [vmem:[#allocation6 + $0xae8] sm:$0xff] }
  0xdb   :  { %1067 = vmatpush.msrb.mxu3 %v617_v5  ;;  %1087 = vmatpush.msra.mxu0 %v665_v6  ;;  %v746_v5 = vld [vmem:[#allocation6 + $0xc68] sm:$0xff]  ;;  %v384_v6 = vld [vmem:[#allocation6 + $0x118] sm:$0xff] }
  0xdc   :  { %1035 = vmatpush.msrb.mxu1 %v497_v7  ;;  %1051 = vmatpush.msrb.mxu2 %v557_v8  ;;  %v432_v7 = vld [vmem:[#allocation6 + $0x298] sm:$0xff]  ;;  %v695_v8 = vld [vmem:[#allocation6 + $0xad0] sm:$0xff] }
  0xdd   :  { %1068 = vmatpush.msrb.mxu3 %v614_v10  ;;  %1088 = vmatpush.msra.mxu0 %v662_v11  ;;  %v743_v10 = vld [vmem:[#allocation6 + $0xc50] sm:$0xff]  ;;  %v381_v11 = vld [vmem:[#allocation6 + $0x100] sm:$0xff] }
  0xde   :  { %1036 = vmatpush.msrb.mxu1 %v494_v14  ;;  %1052 = vmatpush.msrb.mxu2 %v554_v16  ;;  %v429_v14 = vld [vmem:[#allocation6 + $0x280] sm:$0xff]  ;;  %v692_v16 = vld [vmem:[#allocation6 + $0xab8] sm:$0xff] }
  0xdf   :  { %1069 = vmatpush.msrb.mxu3 %v611_v17  ;;  %1089 = vmatpush.msra.mxu0 %v659_v18  ;;  %v740_v17 = vld [vmem:[#allocation6 + $0xc38] sm:$0xff]  ;;  %v378_v18 = vld [vmem:[#allocation6 + $0xe8] sm:$0xff] }
  0xe0   :  { %1037 = vmatmul.f32.vlgmr.msrb.gmra.mxu1 %v1541_v13  ;;  %1053 = vmatpush.msrb.mxu2 %v551_v19  ;;  %v426_v19 = vld [vmem:[#allocation6 + $0x268] sm:$0xff] }
  0xe1   :  { %1101 = vmatpush.msra.mxu1 %v731_v20  ;;  %1070 = vmatpush.msrb.mxu3 %v608_v21  ;;  %v689_v20 = vld [vmem:[#allocation6 + $0xaa0] sm:$0xff] }
  0xe2   :  { %1090 = vmatpush.msra.mxu0 %v656_v22  ;;  %1054 = vmatpush.msrb.mxu2 %v548_v23  ;;  %v737_v21 = vld [vmem:[#allocation6 + $0xc20] sm:$0xff]  ;;  %v375_v22 = vld [vmem:[#allocation6 + $0xd0] sm:$0xff] }
  0xe3   :  { %1102 = vmatpush.msra.mxu1 %v728_v24  ;;  %1071 = vmatpush.msrb.mxu3 %v605_v25  ;;  %v423_v23 = vld [vmem:[#allocation6 + $0x250] sm:$0xff]  ;;  %v686_v24 = vld [vmem:[#allocation6 + $0xa88] sm:$0xff] }
  0xe4   :  { %1091 = vmatpush.msra.mxu0 %v653_v26  ;;  %1055 = vmatpush.msrb.mxu2 %v545_v27  ;;  %v734_v25 = vld [vmem:[#allocation6 + $0xc08] sm:$0xff]  ;;  %v372_v26 = vld [vmem:[#allocation6 + $0xb8] sm:$0xff] }
  0xe5   :  { %1103 = vmatpush.msra.mxu1 %v725_v28  ;;  %1072 = vmatpush.msrb.mxu3 %v602_v29  ;;  %v420_v27 = vld [vmem:[#allocation6 + $0x238] sm:$0xff] }
  0xe6   :  { %1092 = vmatpush.msra.mxu0 %v650_v30  ;;  %1056 = vmatpush.msrb.mxu2 %v542_v32  ;;  %v492_v28 = vld [vmem:[#allocation6 + $0x478] sm:$0xff]  ;;  %v369_v30 = vld [vmem:[#allocation6 + $0xa0] sm:$0xff] }
  0xe7   :  { %1104 = vmatpush.msra.mxu1 %v722_v33  ;;  %1073 = vmatpush.msrb.mxu3 %v599_v34  ;;  %v540_v29 = vld [vmem:[#allocation6 + $0x5f8] sm:$0xff]  ;;  %v417_v32 = vld [vmem:[#allocation6 + $0x220] sm:$0xff] }
  0xe8   :  { %1093 = vmatpush.msra.mxu0 %v647_v35  ;;  %1057 = vmatmul.f32.vlgmr.msrb.gmra.mxu2 %v1550_v39  ;;  %v489_v33 = vld [vmem:[#allocation6 + $0x460] sm:$0xff]  ;;  %v366_v35 = vld [vmem:[#allocation6 + $0x88] sm:$0xff] }
  0xe9   :  { %1105 = vmatpush.msra.mxu1 %v719_v36  ;;  %1125 = vmatpush.msra.mxu2 %v767_v37  ;;  %v537_v34 = vld [vmem:[#allocation6 + $0x5e0] sm:$0xff]  ;;  %v414_v36 = vld [vmem:[#allocation6 + $0x208] sm:$0xff] }
  0xea   :  { %1074 = vmatpush.msrb.mxu3 %v596_v38  ;;  %1094 = vmatpush.msra.mxu0 %v644_v40  ;;  %v486_v37 = vld [vmem:[#allocation6 + $0x448] sm:$0xff]  ;;  %v363_v40 = vld [vmem:[#allocation6 + $0x70] sm:$0xff] }
  0xeb   :  { %1106 = vmatpush.msra.mxu1 %v716_v41  ;;  %1126 = vmatpush.msra.mxu2 %v764_v42  ;;  %v534_v38 = vld [vmem:[#allocation6 + $0x5c8] sm:$0xff]  ;;  %v411_v41 = vld [vmem:[#allocation6 + $0x1f0] sm:$0xff] }
  0xec   :  { %1075 = vmatpush.msrb.mxu3 %v593_v43  ;;  %1095 = vmatpush.msra.mxu0 %v641_v44  ;;  %v483_v42 = vld [vmem:[#allocation6 + $0x430] sm:$0xff]  ;;  %v360_v44 = vld [vmem:[#allocation6 + $0x58] sm:$0xff] }
  0xed   :  { %1107 = vmatpush.msra.mxu1 %v713_v45  ;;  %1127 = vmatpush.msra.mxu2 %v761_v46  ;;  %v531_v43 = vld [vmem:[#allocation6 + $0x5b0] sm:$0xff]  ;;  %v408_v45 = vld [vmem:[#allocation6 + $0x1d8] sm:$0xff] }
  0xee   :  { %1076 = vmatpush.msrb.mxu3 %v590_v48  ;;  %1096 = vmatpush.msra.mxu0 %v638_v49  ;;  %v480_v46 = vld [vmem:[#allocation6 + $0x418] sm:$0xff]  ;;  %v357_v49 = vld [vmem:[#allocation6 + $0x40] sm:$0xff] }
  0xef   :  { %1077 = vmatmul.f32.vlgmr.msrb.gmra.mxu3 %v1547_v31  ;;  %1097 = vmatmul.f32.vlgmr.msra.gmra.mxu0 %v1553_v47  ;;  %v528_v48 = vld [vmem:[#allocation6 + $0x598] sm:$0xff] }
  0xf0   :  { %1108 = vmatpush.msra.mxu1 %v710_v50  ;;  %1128 = vmatpush.msra.mxu2 %v758_v51  ;;  %v405_v50 = vld [vmem:[#allocation6 + $0x1c0] sm:$0xff] }
  0xf1   :  { %1141 = vmatpush.msra.mxu3 %v396_v52  ;;  %1161 = vmatpush.msrb.mxu0 %v444_v53  ;;  %v477_v51 = vld [vmem:[#allocation6 + $0x400] sm:$0xff]  ;;  %v354_v53 = vld [vmem:[#allocation6 + $0x28] sm:$0xff] }
  0xf2   :  { %1109 = vmatpush.msra.mxu1 %v707_v54  ;;  %1129 = vmatpush.msra.mxu2 %v755_v56  ;;  %v525_v52 = vld [vmem:[#allocation6 + $0x580] sm:$0xff]  ;;  %v402_v54 = vld [vmem:[#allocation6 + $0x1a8] sm:$0xff] }
  0xf3   :  { %1142 = vmatpush.msra.mxu3 %v393_v57  ;;  %1162 = vmatpush.msrb.mxu0 %v441_v58  ;;  %v474_v56 = vld [vmem:[#allocation6 + $0x3e8] sm:$0xff]  ;;  %v351_v58 = vld [vmem:[#allocation6 + $0x10] sm:$0xff] }
  0xf4   :  { %1110 = vmatpush.msra.mxu1 %v704_v59  ;;  %1130 = vmatpush.msra.mxu2 %v752_v60  ;;  %v522_v57 = vld [vmem:[#allocation6 + $0x568] sm:$0xff]  ;;  %v399_v59 = vld [vmem:[#allocation6 + $0x190] sm:$0xff] }
  0xf5   :  { %1143 = vmatpush.msra.mxu3 %v390_v61  ;;  %1163 = vmatpush.msrb.mxu0 %v438_v0  ;;  %v471_v60 = vld [vmem:[#allocation6 + $0x3d0] sm:$0xff]  ;;  %v588_v0 = vld [vmem:[#allocation6 + $0x778] sm:$0xff] }
  0xf6   :  { %1111 = vmatpush.msra.mxu1 %v701_v55  ;;  %1131 = vmatpush.msra.mxu2 %v749_v1  ;;  %v519_v61 = vld [vmem:[#allocation6 + $0x550] sm:$0xff]  ;;  %v636_v55 = vld [vmem:[#allocation6 + $0x8f8] sm:$0xff] }
  0xf7   :  { %1144 = vmatpush.msra.mxu3 %v387_v2  ;;  %1164 = vmatpush.msrb.mxu0 %v435_v3  ;;  %v468_v1 = vld [vmem:[#allocation6 + $0x3b8] sm:$0xff]  ;;  %v585_v3 = vld [vmem:[#allocation6 + $0x760] sm:$0xff] }
  0xf8   :  { %1112 = vmatpush.msra.mxu1 %v698_v4  ;;  %1132 = vmatpush.msra.mxu2 %v746_v5  ;;  %v516_v2 = vld [vmem:[#allocation6 + $0x538] sm:$0xff]  ;;  %v633_v4 = vld [vmem:[#allocation6 + $0x8e0] sm:$0xff] }
  0xf9   :  { %1145 = vmatpush.msra.mxu3 %v384_v6  ;;  %1165 = vmatpush.msrb.mxu0 %v432_v7  ;;  %v465_v5 = vld [vmem:[#allocation6 + $0x3a0] sm:$0xff]  ;;  %v582_v7 = vld [vmem:[#allocation6 + $0x748] sm:$0xff] }
  0xfa   :  { %1113 = vmatpush.msra.mxu1 %v695_v8  ;;  %1133 = vmatpush.msra.mxu2 %v743_v10  ;;  %v513_v6 = vld [vmem:[#allocation6 + $0x520] sm:$0xff]  ;;  %v630_v8 = vld [vmem:[#allocation6 + $0x8c8] sm:$0xff] }
  0xfb   :  { %1146 = vmatpush.msra.mxu3 %v381_v11  ;;  %1166 = vmatpush.msrb.mxu0 %v429_v14  ;;  %v462_v10 = vld [vmem:[#allocation6 + $0x388] sm:$0xff]  ;;  %v627_v11 = vld [vmem:[#allocation6 + $0x8b0] sm:$0xff] }
  0xfc   :  { %1114 = vmatpush.msra.mxu1 %v692_v16  ;;  %1134 = vmatpush.msra.mxu2 %v740_v17  ;;  %v459_v14 = vld [vmem:[#allocation6 + $0x370] sm:$0xff]  ;;  %v576_v17 = vld [vmem:[#allocation6 + $0x718] sm:$0xff] }
  0xfd   :  { %1147 = vmatpush.msra.mxu3 %v378_v18  ;;  %1167 = vmatpush.msrb.mxu0 %v426_v19  ;;  %v507_v16 = vld [vmem:[#allocation6 + $0x4f0] sm:$0xff]  ;;  %v624_v18 = vld [vmem:[#allocation6 + $0x898] sm:$0xff] }
  0xfe   :  { %1115 = vmatpush.msra.mxu1 %v689_v20  ;;  %1135 = vmatpush.msra.mxu2 %v737_v21  ;;  %v456_v19 = vld [vmem:[#allocation6 + $0x358] sm:$0xff]  ;;  %v573_v21 = vld [vmem:[#allocation6 + $0x700] sm:$0xff] }
  0xff   :  { %1148 = vmatpush.msra.mxu3 %v375_v22  ;;  %1168 = vmatpush.msrb.mxu0 %v423_v23  ;;  %v504_v20 = vld [vmem:[#allocation6 + $0x4d8] sm:$0xff]  ;;  %v621_v22 = vld [vmem:[#allocation6 + $0x880] sm:$0xff] }
 0x100   :  { %1116 = vmatpush.msra.mxu1 %v686_v24  ;;  %1136 = vmatpush.msra.mxu2 %v734_v25  ;;  %v453_v23 = vld [vmem:[#allocation6 + $0x340] sm:$0xff]  ;;  %v570_v25 = vld [vmem:[#allocation6 + $0x6e8] sm:$0xff] }
 0x101   :  { %1149 = vmatpush.msra.mxu3 %v372_v26  ;;  %1169 = vmatpush.msrb.mxu0 %v420_v27  ;;  %v501_v24 = vld [vmem:[#allocation6 + $0x4c0] sm:$0xff]  ;;  %v618_v26 = vld [vmem:[#allocation6 + $0x868] sm:$0xff] }
 0x102   :  { %1117 = vmatmul.f32.vlgmr.msra.gmra.mxu1 %v1558_v9  ;;  %1341 = vmatmul.msk.f32.vlgmr.msra.gmra.mxu2 %vm777_vm1, %v1560_v15  ;;  %v450_v27 = vld [vmem:[#allocation6 + $0x328] sm:$0xff] }
 0x103   :  { %1181 = vmatpush.msrb.mxu1 %v492_v28  ;;  %1201 = vmatpush.msrb.mxu2 %v540_v29  ;;  %v498_v28 = vld [vmem:[#allocation6 + $0x4a8] sm:$0xff]  ;;  %v567_v29 = vld [vmem:[#allocation6 + $0x6d0] sm:$0xff] }
 0x104   :  { %1150 = vmatpush.msra.mxu3 %v369_v30  ;;  %1170 = vmatpush.msrb.mxu0 %v417_v32  ;;  %v615_v30 = vld [vmem:[#allocation6 + $0x850] sm:$0xff]  ;;  %v1577_v32 = vld [vmem:[#allocation7] sm:$0x7] }
 0x105   :  { %1182 = vmatpush.msrb.mxu1 %v489_v33  ;;  %1202 = vmatpush.msrb.mxu2 %v537_v34  ;;  %v447_v33 = vld [vmem:[#allocation6 + $0x310] sm:$0xff] }
 0x106   :  { %1151 = vmatpush.msra.mxu3 %v366_v35  ;;  %1171 = vmatpush.msrb.mxu0 %v414_v36  ;;  %v495_v34 = vld [vmem:[#allocation6 + $0x490] sm:$0xff]  ;;  %v564_v35 = vld [vmem:[#allocation6 + $0x6b8] sm:$0xff] }
 0x107   :  { %1183 = vmatpush.msrb.mxu1 %v486_v37  ;;  %1203 = vmatpush.msrb.mxu2 %v534_v38  ;;  %v612_v36 = vld [vmem:[#allocation6 + $0x838] sm:$0xff]  ;;  %v771_v37 = vperm.slane %v1577_v32, 0 }
 0x108   :  { %1152 = vmatpush.msra.mxu3 %v363_v40  ;;  %1172 = vmatpush.msrb.mxu0 %v411_v41  ;;  %v684_v38 = vld [vmem:[#allocation6 + $0xa78] sm:$0xff] }
 0x109   :  { %1184 = vmatpush.msrb.mxu1 %v483_v42  ;;  %1204 = vmatpush.msrb.mxu2 %v531_v43  ;;  %v732_v40 = vld [vmem:[#allocation6 + $0xbf8] sm:$0xff]  ;;  %v561_v42 = vld [vmem:[#allocation6 + $0x6a0] sm:$0xff] }
 0x10a   :  { %1153 = vmatpush.msra.mxu3 %v360_v44  ;;  %1173 = vmatpush.msrb.mxu0 %v408_v45  ;;  %v609_v43 = vld [vmem:[#allocation6 + $0x820] sm:$0xff] }
 0x10b   :  { %1185 = vmatpush.msrb.mxu1 %v480_v46  ;;  %1205 = vmatpush.msrb.mxu2 %v528_v48  ;;  %v681_v44 = vld [vmem:[#allocation6 + $0xa60] sm:$0xff]  ;;  %v558_v46 = vld [vmem:[#allocation6 + $0x688] sm:$0xff] }
 0x10c   :  { %1154 = vmatpush.msra.mxu3 %v357_v49  ;;  %1174 = vmatpush.msrb.mxu0 %v405_v50  ;;  %v729_v45 = vld [vmem:[#allocation6 + $0xbe0] sm:$0xff]  ;;  %v606_v48 = vld [vmem:[#allocation6 + $0x808] sm:$0xff] }
 0x10d   :  { %1186 = vmatpush.msrb.mxu1 %v477_v51  ;;  %1206 = vmatpush.msrb.mxu2 %v525_v52  ;;  %v678_v50 = vld [vmem:[#allocation6 + $0xa48] sm:$0xff] }
 0x10e   :  { %1155 = vmatpush.msra.mxu3 %v354_v53  ;;  %1175 = vmatpush.msrb.mxu0 %v402_v54  ;;  %v726_v51 = vld [vmem:[#allocation6 + $0xbc8] sm:$0xff]  ;;  %v555_v53 = vld [vmem:[#allocation6 + $0x670] sm:$0xff] }
 0x10f   :  { %1187 = vmatpush.msrb.mxu1 %v474_v56  ;;  %1207 = vmatpush.msrb.mxu2 %v522_v57  ;;  %v603_v54 = vld [vmem:[#allocation6 + $0x7f0] sm:$0xff]  ;;  %v552_v56 = vld [vmem:[#allocation6 + $0x658] sm:$0xff] }
 0x110   :  { %1156 = vmatpush.msra.mxu3 %v351_v58  ;;  %1176 = vmatpush.msrb.mxu0 %v399_v59  ;;  %v600_v57 = vld [vmem:[#allocation6 + $0x7d8] sm:$0xff] }
 0x111   :  { %1157 = vmatmul.f32.vlgmr.msra.gmra.mxu3 %v1531_v62  ;;  %1177 = vmatmul.f32.vlgmr.msrb.gmra.mxu0 %v1533_v63  ;;  %v510_v62 = vld [vmem:[#allocation6 + $0x508] sm:$0xff]  ;;  %v579_v63 = vld [vmem:[#allocation6 + $0x730] sm:$0xff]  ;;  %v672_v59 = vld [vmem:[#allocation6 + $0xa18] sm:$0xff] }
 0x112   :  { %1188 = vmatpush.msrb.mxu1 %v471_v60  ;;  %1208 = vmatpush.msrb.mxu2 %v519_v61  ;;  %v720_v60 = vld [vmem:[#allocation6 + $0xb98] sm:$0xff]  ;;  %v549_v61 = vld [vmem:[#allocation6 + $0x640] sm:$0xff] }
 0x113   :  { %1221 = vmatpush.msrb.mxu3 %v588_v0  ;;  %1241 = vmatpush.msra.mxu0 %v636_v55  ;;  %v597_v0 = vld [vmem:[#allocation6 + $0x7c0] sm:$0xff] }
 0x114   :  { %1189 = vmatpush.msrb.mxu1 %v468_v1  ;;  %1209 = vmatpush.msrb.mxu2 %v516_v2  ;;  %v669_v55 = vld [vmem:[#allocation6 + $0xa00] sm:$0xff] }
 0x115   :  { %1222 = vmatpush.msrb.mxu3 %v585_v3  ;;  %1242 = vmatpush.msra.mxu0 %v633_v4  ;;  %v717_v1 = vld [vmem:[#allocation6 + $0xb80] sm:$0xff]  ;;  %v546_v3 = vld [vmem:[#allocation6 + $0x628] sm:$0xff] }
 0x116   :  { %1190 = vmatpush.msrb.mxu1 %v465_v5  ;;  %1210 = vmatpush.msrb.mxu2 %v513_v6  ;;  %v594_v4 = vld [vmem:[#allocation6 + $0x7a8] sm:$0xff] }
 0x117   :  { %1223 = vmatpush.msrb.mxu3 %v582_v7  ;;  %1243 = vmatpush.msra.mxu0 %v630_v8  ;;  %v666_v6 = vld [vmem:[#allocation6 + $0x9e8] sm:$0xff] }
 0x118   :  { %1191 = vmatpush.msrb.mxu1 %v462_v10  ;;  %1211 = vmatpush.msrb.mxu2 %v510_v62  ;;  %v714_v7 = vld [vmem:[#allocation6 + $0xb68] sm:$0xff]  ;;  %v543_v10 = vld [vmem:[#allocation6 + $0x610] sm:$0xff] }
 0x119   :  { %1224 = vmatpush.msrb.mxu3 %v579_v63  ;;  %1244 = vmatpush.msra.mxu0 %v627_v11  ;;  %v591_v62 = vld [vmem:[#allocation6 + $0x790] sm:$0xff] }
 0x11a   :  { %1192 = vmatpush.msrb.mxu1 %v459_v14  ;;  %1212 = vmatpush.msrb.mxu2 %v507_v16  ;;  %v663_v63 = vld [vmem:[#allocation6 + $0x9d0] sm:$0xff]  ;;  %v768_v16 = vld [vmem:[#allocation6 + $0xd18] sm:$0xff] }
 0x11b   :  { %1225 = vmatpush.msrb.mxu3 %v576_v17  ;;  %1245 = vmatpush.msra.mxu0 %v624_v18  ;;  %v711_v11 = vld [vmem:[#allocation6 + $0xb50] sm:$0xff]  ;;  %v660_v18 = vld [vmem:[#allocation6 + $0x9b8] sm:$0xff] }
 0x11c   :  { %1193 = vmatpush.msrb.mxu1 %v456_v19  ;;  %1213 = vmatpush.msrb.mxu2 %v504_v20  ;;  %v708_v19 = vld [vmem:[#allocation6 + $0xb38] sm:$0xff]  ;;  %v765_v20 = vld [vmem:[#allocation6 + $0xd00] sm:$0xff] }
 0x11d   :  { %1226 = vmatpush.msrb.mxu3 %v573_v21  ;;  %1246 = vmatpush.msra.mxu0 %v621_v22  ;;  %v657_v21 = vld [vmem:[#allocation6 + $0x9a0] sm:$0xff] }
 0x11e   :  { %1194 = vmatpush.msrb.mxu1 %v453_v23  ;;  %1214 = vmatpush.msrb.mxu2 %v501_v24  ;;  %v705_v22 = vld [vmem:[#allocation6 + $0xb20] sm:$0xff]  ;;  %v762_v24 = vld [vmem:[#allocation6 + $0xce8] sm:$0xff] }
 0x11f   :  { %1227 = vmatpush.msrb.mxu3 %v570_v25  ;;  %1247 = vmatpush.msra.mxu0 %v618_v26  ;;  %v798_v41 = vpop.f32.mrf.mxu1  ;;  %v654_v26 = vld [vmem:[#allocation6 + $0x988] sm:$0xff] }
 0x120   :  { %1195 = vmatpush.msrb.mxu1 %v450_v27  ;;  %1215 = vmatpush.msrb.mxu2 %v498_v28  ;;  %v799_v49 = vadd.f32 %v798_v41, %v771_v37  ;;  %v702_v27 = vld [vmem:[#allocation6 + $0xb08] sm:$0xff]  ;;  %v699_v28 = vld [vmem:[#allocation6 + $0xaf0] sm:$0xff]  ;;  %v753_v37 = vld [vmem:[#allocation6 + $0xca0] sm:$0xff] }
 0x121   :  { %1228 = vmatpush.msrb.mxu3 %v567_v29  ;;  %1248 = vmatpush.msra.mxu0 %v615_v30  ;;  %v756_v30 = vld [vmem:[#allocation6 + $0xcb8] sm:$0xff] }
 0x122   :  { %1196 = vmatpush.msrb.mxu1 %v447_v33  ;;  %1216 = vmatpush.msrb.mxu2 %v495_v34  ;;  %v648_v34 = vld [vmem:[#allocation6 + $0x958] sm:$0xff] }
 0x123   :  { %1229 = vmatpush.msrb.mxu3 %v564_v35  ;;  %1249 = vmatpush.msra.mxu0 %v612_v36  ;;  %v696_v35 = vld [vmem:[#allocation6 + $0xad8] sm:$0xff] }
 0x124   :  { %1197 = vmatmul.f32.vlgmr.msrb.gmra.mxu1 %v1539_v12  ;;  %1217 = vmatmul.f32.vlgmr.msrb.gmra.mxu2 %v1541_v13  ;;  %v675_v12 = vld [vmem:[#allocation6 + $0xa30] sm:$0xff] }
 0x125   :  { %1261 = vmatpush.msra.mxu1 %v684_v38  ;;  %1281 = vmatpush.msra.mxu2 %v732_v40  ;;  %v818_v52 = vpop.f32.mrf.mxu2  ;;  %v723_v13 = vld [vmem:[#allocation6 + $0xbb0] sm:$0xff]  ;;  %v645_v38 = vld [vmem:[#allocation6 + $0x940] sm:$0xff] }
 0x126   :  { %1230 = vmatpush.msrb.mxu3 %v561_v42  ;;  %1250 = vmatpush.msra.mxu0 %v609_v43  ;;  %v819_v58 = vadd.f32 %v818_v52, %v799_v49  ;;  %v858_v8 = vpop.f32.mrf.mxu0  ;;  %v693_v40 = vld [vmem:[#allocation6 + $0xac0] sm:$0xff]  ;;  %v750_v42 = vld [vmem:[#allocation6 + $0xc88] sm:$0xff]  ;;  %v744_v52 = vld [vmem:[#allocation6 + $0xc58] sm:$0xff] }
 0x127   :  { %1262 = vmatpush.msra.mxu1 %v681_v44  ;;  %1282 = vmatpush.msra.mxu2 %v729_v45  ;;  %v642_v44 = vld [vmem:[#allocation6 + $0x928] sm:$0xff] }
 0x128   :  { %1231 = vmatpush.msrb.mxu3 %v558_v46  ;;  %1251 = vmatpush.msra.mxu0 %v606_v48  ;;  %v690_v45 = vld [vmem:[#allocation6 + $0xaa8] sm:$0xff]  ;;  %v747_v48 = vld [vmem:[#allocation6 + $0xc70] sm:$0xff] }
 0x129   :  { %1263 = vmatpush.msra.mxu1 %v678_v50  ;;  %1283 = vmatpush.msra.mxu2 %v726_v51  ;;  %v639_v50 = vld [vmem:[#allocation6 + $0x910] sm:$0xff] }
 0x12a   :  { %1232 = vmatpush.msrb.mxu3 %v555_v53  ;;  %1252 = vmatpush.msra.mxu0 %v603_v54  ;;  %v687_v51 = vld [vmem:[#allocation6 + $0xa90] sm:$0xff]  ;;  %v741_v53 = vld [vmem:[#allocation6 + $0xc40] sm:$0xff]  ;;  %v738_v54 = vld [vmem:[#allocation6 + $0xc28] sm:$0xff] }
 0x12b   :  { %1264 = vmatpush.msra.mxu1 %v675_v12  ;;  %1284 = vmatpush.msra.mxu2 %v723_v13  ;;  %v735_v12 = vld [vmem:[#allocation6 + $0xc10] sm:$0xff]  ;;  %v772_v13 = vperm.slane %v1577_v32, 1 }
 0x12c   :  { %1233 = vmatpush.msrb.mxu3 %v552_v56  ;;  %1253 = vmatpush.msra.mxu0 %v600_v57  ;;  %v838_v2 = vpop.f32.mrf.mxu3 }
 0x12d   :  { %1265 = vmatpush.msra.mxu1 %v672_v59  ;;  %1285 = vmatpush.msra.mxu2 %v720_v60  ;;  %v839_v5 = vadd.f32 %v838_v2, %v819_v58 }
 0x12e   :  { %1234 = vmatpush.msrb.mxu3 %v549_v61  ;;  %1254 = vmatpush.msra.mxu0 %v597_v0 }
 0x12f   :  { %1266 = vmatpush.msra.mxu1 %v669_v55  ;;  %1286 = vmatpush.msra.mxu2 %v717_v1  ;;  %v859_v14 = vadd.f32 %v858_v8, %v839_v5  ;;  %v773_v8 = vperm.slane %v1577_v32, 2 }
 0x130   :  { %1235 = vmatpush.msrb.mxu3 %v546_v3  ;;  %1255 = vmatpush.msra.mxu0 %v594_v4 }
 0x131   :  { %1267 = vmatpush.msra.mxu1 %v666_v6  ;;  %1287 = vmatpush.msra.mxu2 %v714_v7  ;;  %v878_v17 = vpop.f32.mrf.mxu1 }
 0x132   :  { %1236 = vmatpush.msrb.mxu3 %v543_v10  ;;  %1256 = vmatpush.msra.mxu0 %v591_v62  ;;  %v879_v23 = vadd.f32 %v878_v17, %v859_v14 }
 0x133   :  { %1237 = vmatmul.f32.vlgmr.msrb.gmra.mxu3 %v1550_v39  ;;  %1257 = vmatmul.f32.vlgmr.msra.gmra.mxu0 %v1547_v31  ;;  %v898_v25 = vpop.f32.mrf.mxu2  ;;  %v759_v39 = vld [vmem:[#allocation6 + $0xcd0] sm:$0xff] }
 0x134   :  { %1268 = vmatpush.msra.mxu1 %v663_v63  ;;  %1288 = vmatpush.msra.mxu2 %v711_v11  ;;  %v651_v31 = vld [vmem:[#allocation6 + $0x970] sm:$0xff]  ;;  %v899_v29 = vadd.f32 %v898_v25, %v879_v23 }
 0x135   :  { %1305 = vmatpush.msra.mxu3 %v768_v16 }
 0x136   :  { %1269 = vmatpush.msra.mxu1 %v660_v18  ;;  %1289 = vmatpush.msra.mxu2 %v708_v19 }
 0x137   :  { %1306 = vmatpush.msra.mxu3 %v765_v20 }
 0x138   :  { %1270 = vmatpush.msra.mxu1 %v657_v21  ;;  %1290 = vmatpush.msra.mxu2 %v705_v22 }
 0x139   :  { %1307 = vmatpush.msra.mxu3 %v762_v24 }
 0x13a   :  { %1271 = vmatpush.msra.mxu1 %v654_v26  ;;  %1291 = vmatpush.msra.mxu2 %v702_v27  ;;  %v918_v33 = vpop.f32.mrf.mxu3 }
 0x13b   :  { %1308 = vmatpush.msra.mxu3 %v759_v39  ;;  %v919_v36 = vadd.f32 %v918_v33, %v899_v29 }
 0x13c   :  { %1272 = vmatpush.msra.mxu1 %v651_v31  ;;  %1292 = vmatpush.msra.mxu2 %v699_v28 }
 0x13d   :  { %1309 = vmatpush.msra.mxu3 %v756_v30  ;;  %v938_v41 = vpop.f32.mrf.mxu0 }
 0x13e   :  { %1273 = vmatpush.msra.mxu1 %v648_v34  ;;  %1293 = vmatpush.msra.mxu2 %v696_v35  ;;  %v939_v43 = vadd.f32 %v938_v41, %v919_v36 }
 0x13f   :  { %1310 = vmatpush.msra.mxu3 %v753_v37  ;;  %v958_v46 = vpop.f32.mrf.mxu1 }
 0x140   :  { %1274 = vmatpush.msra.mxu1 %v645_v38  ;;  %1294 = vmatpush.msra.mxu2 %v693_v40  ;;  %v959_v49 = vadd.f32 %v958_v46, %v939_v43 }
 0x141   :  { %1311 = vmatpush.msra.mxu3 %v750_v42 }
 0x142   :  { %1275 = vmatpush.msra.mxu1 %v642_v44  ;;  %1295 = vmatpush.msra.mxu2 %v690_v45  ;;  %1321 = vst [vmem:[%s1604_s5] sm:$0xff] %v959_v49 }
 0x143   :  { %1312 = vmatpush.msra.mxu3 %v747_v48 }
 0x144   :  { %1276 = vmatpush.msra.mxu1 %v639_v50  ;;  %1296 = vmatpush.msra.mxu2 %v687_v51 }
 0x145   :  { %1313 = vmatpush.msra.mxu3 %v744_v52  ;;  %1277 = vmatmul.f32.vlgmr.msra.gmra.mxu1 %v1553_v47 }
 0x146   :  { %1297 = vmatmul.f32.vlgmr.msra.gmra.mxu2 %v1558_v9 }
 0x147   :  { %1314 = vmatpush.msra.mxu3 %v741_v53 }
 0x149   :  { %1315 = vmatpush.msra.mxu3 %v738_v54  ;;  %v978_v56 = vpop.f32.mrf.mxu2 }
 0x14a   :  { %v979_v58 = vadd.f32 %v978_v56, %v772_v13  ;;  %v1018_v60 = vpop.f32.mrf.mxu0 }
 0x14b   :  { %1316 = vmatpush.msra.mxu3 %v735_v12 }
 0x14c   :  { %1342 = vmatmul.msk.f32.vlgmr.msra.gmra.mxu3 %vm777_vm1, %v1560_v15 }
 0x150   :  { %v998_v57 = vpop.f32.mrf.mxu3 }
 0x151   :  { %v999_v59 = vadd.f32 %v998_v57, %v979_v58 }
 0x153   :  { %v1019_v0 = vadd.f32 %v1018_v60, %v999_v59 }
 0x15d   :  { %v1038_v61 = vpop.f32.mrf.mxu1 }
 0x15e   :  { %v1039_v55 = vadd.f32 %v1038_v61, %v1019_v0 }
 0x16b   :  { %v1058_v47 = vpop.f32.mrf.mxu2 }
 0x16c   :  { %v1059_v1 = vadd.f32 %v1058_v47, %v1039_v55  ;;  %v1098_v3 = vpop.f32.mrf.mxu0 }
 0x172   :  { %v1078_v9 = vpop.f32.mrf.mxu3 }
 0x173   :  { %v1079_v2 = vadd.f32 %v1078_v9, %v1059_v1 }
 0x175   :  { %v1099_v5 = vadd.f32 %v1098_v3, %v1079_v2 }
 0x17f   :  { %v1118_v4 = vpop.f32.mrf.mxu1 }
 0x180   :  { %v1119_v6 = vadd.f32 %v1118_v4, %v1099_v5 }
 0x185   :  { %v1138_v7 = vpop.f32.mrf.mxu2 }
 0x186   :  { %v1139_v15 = vadd.f32 %v1138_v7, %v1119_v6 }
 0x188   :  { %1322 = vst [vmem:[%s1604_s5 + $0x8] sm:$0xff] %v1139_v15 }
 0x18e   :  { %v1178_v63 = vpop.f32.mrf.mxu0 }
 0x194   :  { %v1158_v10 = vpop.f32.mrf.mxu3 }
 0x195   :  { %v1159_v62 = vadd.f32 %v1158_v10, %v773_v8 }
 0x197   :  { %v1179_v14 = vadd.f32 %v1178_v63, %v1159_v62 }
 0x1a1   :  { %v1198_v11 = vpop.f32.mrf.mxu1 }
 0x1a2   :  { %v1199_v17 = vadd.f32 %v1198_v11, %v1179_v14 }
 0x1a7   :  { %v1218_v16 = vpop.f32.mrf.mxu2 }
 0x1a8   :  { %v1219_v19 = vadd.f32 %v1218_v16, %v1199_v17 }
 0x1b0   :  { %v1258_v21 = vpop.f32.mrf.mxu0 }
 0x1b6   :  { %v1238_v18 = vpop.f32.mrf.mxu3 }
 0x1b7   :  { %v1239_v20 = vadd.f32 %v1238_v18, %v1219_v19 }
 0x1b9   :  { %v1259_v23 = vadd.f32 %v1258_v21, %v1239_v20 }
 0x1c2   :  { %v1278_v22 = vpop.f32.mrf.mxu1 }
 0x1c3   :  { %v1279_v25 = vadd.f32 %v1278_v22, %v1259_v23 }
 0x1c9   :  { %v1298_v24 = vpop.f32.mrf.mxu2 }
 0x1ca   :  { %v1299_v26 = vadd.f32 %v1298_v24, %v1279_v25 }
 0x1cf   :  { %v1318_v27 = vpop.f32.mrf.mxu3 }
 0x1d0   :  { %v1319_v39 = vadd.f32 %v1318_v27, %v1299_v26 }
 0x1d2   :  { %1323 = vst [vmem:[%s1604_s5 + $0x10] sm:$0xff] %v1319_v39 }
 0x1d3   :  { %1328 = vsyncpa [#allocation3], 1 }
 0x1d4   :  { %1329 = vsyncpa [#allocation5], 1 }
 0x1d5   :  { %1330 = vsyncpa [#allocation8], 1 }

</bundles_post_ra>
